<compile_context>
chip_gen: v7x
topology: tpu7x:2x2x1
jax: 0.10.0
libtpu: 0.0.40
codegen_flags: <defaults>
</compile_context>

<pallas_src>
import functools

import jax
import jax.numpy as jnp
from jax.experimental import pallas as pl
from jax.experimental.pallas import tpu as pltpu


# ----------------------------------------------------------------------------
# Static problem configuration (small shapes consistent with the module).
# ----------------------------------------------------------------------------
B = 2            # batch
C_IN = 4         # encoder input channels
C_OUT = 8        # encoder output channels
H = W = 16       # spatial
MID_DIM = 32     # MLP hidden size ("mid_dim")
OUT_DIM = 16     # MLP projection size ("out_dim")

KH = KW = 3      # encoder conv kernel (padding = 1, stride = 1)
IN_DIM = C_OUT * H * W         # flattened encoder output (backbone.fc.in_features)
BN_EPS = 1e-5

LANE = 128
MIDP = 128       # MID_DIM zero-padded to a full lane width
OUTP = 128       # OUT_DIM zero-padded to a full lane width (lane-dense out store)


# ----------------------------------------------------------------------------
# Fused kernel: one grid step == one batch element.
# ----------------------------------------------------------------------------
def _network_kernel(xp_ref, wc_ref, bc_ref,
                    w1_ref, b1_ref, w2_ref, b2_ref,
                    w3_ref, b3_ref, w4_ref, b4_ref,
                    out_ref, *, return_projection: bool):
    # --- encoder: Conv2d(C_IN->C_OUT, 3x3, pad=1) + ReLU ---------------------
    # xp_ref block: (1, H+2, (W+2)*C_IN); lanes are (width, channel) pairs, so a
    # width shift of dw is a contiguous lane slice of dw*C_IN.
    xpv = xp_ref[0]                                   # (H+2, (W+2)*C_IN)
    acc = jnp.zeros((H, W * C_OUT), jnp.float32)
    for k in range(KH * KW):
        dh, dw = divmod(k, KW)
        xs = xpv[dh:dh + H, dw * C_IN:(dw + W) * C_IN]        # (H, W*C_IN)
        acc += jnp.dot(xs, wc_ref[k], preferred_element_type=jnp.float32)
    emb = jnp.maximum(acc + bc_ref[...], 0.0)          # (H, W*C_OUT) lane-dense

    # --- flatten + projection Linear1 (BatchNorm folded) ---------------------
    # W1 was pre-permuted at init to the kernel's (h, w, c_out) flatten order,
    # so the PyTorch NCHW .view(B, -1) is reproduced with no transpose/reshape:
    #   h1 = sum_h emb[h, :] @ W1[h]
    h1 = b1_ref[...]                                   # (1, MIDP)
    for h in range(H):
        h1 = h1 + jnp.dot(emb[h:h + 1, :], w1_ref[h],
                          preferred_element_type=jnp.float32)
    h1 = jnp.maximum(h1, 0.0)                          # BN folded -> ReLU

    # --- projection Linear2 ---------------------------------------------------
    proj = jnp.dot(h1, w2_ref[...],
                   preferred_element_type=jnp.float32) + b2_ref[...]   # (1, OUTP)

    if return_projection:                              # net == 'target'
        out_ref[0] = proj.astype(out_ref.dtype)
    else:                                              # net == 'online'
        # --- prediction MLP: Linear (+BN folded) -> ReLU -> Linear -----------
        h2 = jnp.maximum(
            jnp.dot(proj, w3_ref[...], preferred_element_type=jnp.float32)
            + b3_ref[...], 0.0)                        # (1, MIDP)
        pred = jnp.dot(h2, w4_ref[...],
                       preferred_element_type=jnp.float32) + b4_ref[...]
        out_ref[0] = pred.astype(out_ref.dtype)


def network_forward(x_nchw, kp, net="online"):
    """x_nchw: (B, C_IN, H, W) f32 -> (B, OUT_DIM) f32 (predict, or project if net=='target')."""
    assert x_nchw.shape == (B, C_IN, H, W)

    # Cheap per-call layout prep (~10 KiB): NCHW -> NHWC, 1-px halo pad, fold
    # (width, channel) into the lane axis so in-kernel shifts are lane slices.
    xp = jnp.pad(jnp.transpose(x_nchw, (0, 2, 3, 1)),
                 ((0, 0), (1, 1), (1, 1), (0, 0)))
    xp = xp.reshape(B, H + 2, (W + 2) * C_IN)

    zeros2 = lambda i: (0, 0)
    zeros3 = lambda i: (0, 0, 0)

    kernel = functools.partial(_network_kernel,
                               return_projection=(net == "target"))
    out = pl.pallas_call(
        kernel,
        out_shape=jax.ShapeDtypeStruct((B, 1, OUTP), jnp.float32),
        grid=(B,),
        in_specs=[
            pl.BlockSpec((1, H + 2, (W + 2) * C_IN), lambda i: (i, 0, 0)),
            pl.BlockSpec((KH * KW, W * C_IN, W * C_OUT), zeros3),   # conv taps
            pl.BlockSpec((1, W * C_OUT), zeros2),                   # conv bias
            pl.BlockSpec((H, W * C_OUT, MIDP), zeros3),             # proj W1 (BN folded)
            pl.BlockSpec((1, MIDP), zeros2),
            pl.BlockSpec((MIDP, OUTP), zeros2),                     # proj W2
            pl.BlockSpec((1, OUTP), zeros2),
            pl.BlockSpec((OUTP, MIDP), zeros2),                     # pred W1 (BN folded)
            pl.BlockSpec((1, MIDP), zeros2),
            pl.BlockSpec((MIDP, OUTP), zeros2),                     # pred W2
            pl.BlockSpec((1, OUTP), zeros2),
        ],
        out_specs=pl.BlockSpec((1, 1, OUTP), lambda i: (i, 0, 0)),
        compiler_params=pltpu.CompilerParams(
            dimension_semantics=("parallel",)),
    )(xp, kp["wc"], kp["bc"], kp["w1"], kp["b1"], kp["w2"], kp["b2"],
      kp["w3"], kp["b3"], kp["w4"], kp["b4"])

    return out[:, 0, :OUT_DIM]


# ----------------------------------------------------------------------------
# Parameter init (PyTorch-layout) and one-time repacking for the kernel.
# ----------------------------------------------------------------------------
def init_torch_params(key):
    ks = jax.random.split(key, 10)
    fan_c = C_IN * KH * KW
    bc = 1.0 / jnp.sqrt(fan_c)
    w_conv = jax.random.uniform(ks[0], (C_OUT, C_IN, KH, KW), jnp.float32, -bc, bc)
    b_conv = jax.random.uniform(ks[1], (C_OUT,), jnp.float32, -bc, bc)

    def linear(kw, kb, in_f, out_f):
        bd = 1.0 / jnp.sqrt(in_f)
        return (jax.random.uniform(kw, (out_f, in_f), jnp.float32, -bd, bd),
                jax.random.uniform(kb, (out_f,), jnp.float32, -bd, bd))

    proj_w1, proj_b1 = linear(ks[2], ks[3], IN_DIM, MID_DIM)
    proj_w2, proj_b2 = linear(ks[4], ks[5], MID_DIM, OUT_DIM)
    pred_w1, pred_b1 = linear(ks[6], ks[7], OUT_DIM, MID_DIM)
    pred_w2, pred_b2 = linear(ks[8], ks[9], MID_DIM, OUT_DIM)

    bn = dict(gamma=jnp.ones((MID_DIM,), jnp.float32),
              beta=jnp.zeros((MID_DIM,), jnp.float32),
              mean=jnp.zeros((MID_DIM,), jnp.float32),
              var=jnp.ones((MID_DIM,), jnp.float32))
    return dict(w_conv=w_conv, b_conv=b_conv,
                proj_w1=proj_w1, proj_b1=proj_b1, proj_w2=proj_w2, proj_b2=proj_b2,
                pred_w1=pred_w1, pred_b1=pred_b1, pred_w2=pred_w2, pred_b2=pred_b2,
                bn1=dict(bn), bn2=dict(bn))


def prepare_kernel_params(p):
    """Init-time repacking: runs once, nothing here is per forward call."""
    # Conv taps, block-diagonalised over width so the conv becomes
    # (H, W*C_IN) @ (W*C_IN, W*C_OUT) with a 128-lane output.
    eye_w = jnp.eye(W, dtype=jnp.float32)
    taps = []
    for dh in range(KH):
        for dw in range(KW):
            wk = p["w_conv"][:, :, dh, dw].T                       # (C_IN, C_OUT)
            taps.append(jnp.einsum("uv,co->ucvo", eye_w, wk)
                        .reshape(W * C_IN, W * C_OUT))
    wc = jnp.stack(taps, axis=0)                                   # (9, W*C_IN, W*C_OUT)
    bc = jnp.tile(p["b_conv"], W)[None, :]                         # (1, W*C_OUT)

    def fold_bn(w_t, b_t, bn):  # Linear (out,in) followed by eval-mode BN1d
        scale = bn["gamma"] / jnp.sqrt(bn["var"] + BN_EPS)
        return w_t.T * scale[None, :], (b_t - bn["mean"]) * scale + bn["beta"]

    def pad2(a, r, c):
        return jnp.pad(a, ((0, r - a.shape[0]), (0, c - a.shape[1])))

    def pad_bias(v, n):
        return jnp.pad(v, (0, n - v.shape[0]))[None, :]

    # Projection Linear1 (+BN): permute columns from PyTorch's NCHW flatten
    # order (c_out, h, w) to the kernel's (h, w, c_out) order, then pad lanes.
    w1, b1 = fold_bn(p["proj_w1"], p["proj_b1"], p["bn1"])         # (IN_DIM, MID)
    w1 = w1.reshape(C_OUT, H, W, MID_DIM)
    w1 = jnp.transpose(w1, (1, 2, 0, 3)).reshape(H, W * C_OUT, MID_DIM)
    w1 = jnp.pad(w1, ((0, 0), (0, 0), (0, MIDP - MID_DIM)))

    w3, b3 = fold_bn(p["pred_w1"], p["pred_b1"], p["bn2"])         # (OUT_DIM, MID)

    return dict(
        wc=wc, bc=bc,
        w1=w1, b1=pad_bias(b1, MIDP),
        w2=pad2(p["proj_w2"].T, MIDP, OUTP), b2=pad_bias(p["proj_b2"], OUTP),
        w3=pad2(w3, OUTP, MIDP), b3=pad_bias(b3, MIDP),
        w4=pad2(p["pred_w2"].T, MIDP, OUTP), b4=pad_bias(p["pred_b2"], OUTP),
    )


# ----------------------------------------------------------------------------
# Pure-JAX reference (eval-mode BatchNorm), for a correctness check.
# ----------------------------------------------------------------------------
def network_reference(x_nchw, p):
    hi = jax.lax.Precision.HIGHEST
    emb = jax.lax.conv_general_dilated(
        x_nchw, p["w_conv"], window_strides=(1, 1), padding=((1, 1), (1, 1)),
        dimension_numbers=("NCHW", "OIHW", "NCHW"), precision=hi)
    emb = jnp.maximum(emb + p["b_conv"][None, :, None, None], 0.0)
    e = emb.reshape(emb.shape[0], -1)

    def mlp(x, w1, b1, w2, b2, bn):
        h = jnp.dot(x, w1.T, precision=hi) + b1
        h = (h - bn["mean"]) / jnp.sqrt(bn["var"] + BN_EPS) * bn["gamma"] + bn["beta"]
        h = jnp.maximum(h, 0.0)
        return jnp.dot(h, w2.T, precision=hi) + b2

    proj = mlp(e, p["proj_w1"], p["proj_b1"], p["proj_w2"], p["proj_b2"], p["bn1"])
    pred = mlp(proj, p["pred_w1"], p["pred_b1"], p["pred_w2"], p["pred_b2"], p["bn2"])
    return pred, proj


if __name__ == "__main__":
    key = jax.random.PRNGKey(0)
    k_x, k_p = jax.random.split(key)

    x = jax.random.normal(k_x, (B, C_IN, H, W), jnp.float32)
    params = init_torch_params(k_p)
    kparams = prepare_kernel_params(params)       # one-time weight repacking

    fwd = jax.jit(network_forward, static_argnames=("net",))
    predict = jax.block_until_ready(fwd(x, kparams, net="online"))
    project = jax.block_until_ready(fwd(x, kparams, net="target"))

    assert predict.shape == (B, OUT_DIM), predict.shape
    assert project.shape == (B, OUT_DIM), project.shape
    assert predict.dtype == jnp.float32

    ref_pred, ref_proj = network_reference(x, params)
    err_pred = float(jnp.max(jnp.abs(predict - ref_pred)))
    err_proj = float(jnp.max(jnp.abs(project - ref_proj)))
    assert err_pred < 2e-3, f"predict mismatch vs reference: {err_pred}"
    assert err_proj < 2e-3, f"project mismatch vs reference: {err_proj}"

    print("KERNEL_OK")
</pallas_src>

<mosaic_0001>
module attributes {stable_mosaic.version = 11 : i64} {
  func.func @_network_kernel(%arg0: i32, %arg1: memref<1x18x72xf32, #tpu.memory_space<vmem>>, %arg2: memref<9x64x128xf32, #tpu.memory_space<vmem>>, %arg3: memref<1x128xf32, #tpu.memory_space<vmem>>, %arg4: memref<16x128x128xf32, #tpu.memory_space<vmem>>, %arg5: memref<1x128xf32, #tpu.memory_space<vmem>>, %arg6: memref<128x128xf32, #tpu.memory_space<vmem>>, %arg7: memref<1x128xf32, #tpu.memory_space<vmem>>, %arg8: memref<128x128xf32, #tpu.memory_space<vmem>>, %arg9: memref<1x128xf32, #tpu.memory_space<vmem>>, %arg10: memref<128x128xf32, #tpu.memory_space<vmem>>, %arg11: memref<1x128xf32, #tpu.memory_space<vmem>>, %arg12: memref<1x1x128xf32, #tpu.memory_space<vmem>>) attributes {dimension_semantics = [#tpu.dimension_semantics<parallel>], iteration_bounds = array<i64: 2>, scalar_prefetch = 0 : i64, scratch_operands = 0 : i64, tpu.core_type = #tpu.core_type<tc>, window_params = [{transform_indices = @transform_0, window_bounds = array<i64: 1, 18, 72>}, {pipeline_mode = #tpu.pipeline_mode<synchronous>, transform_indices = @transform_1, window_bounds = array<i64: 9, 64, 128>}, {pipeline_mode = #tpu.pipeline_mode<synchronous>, transform_indices = @transform_2, window_bounds = array<i64: 1, 128>}, {pipeline_mode = #tpu.pipeline_mode<synchronous>, transform_indices = @transform_3, window_bounds = array<i64: 16, 128, 128>}, {pipeline_mode = #tpu.pipeline_mode<synchronous>, transform_indices = @transform_4, window_bounds = array<i64: 1, 128>}, {pipeline_mode = #tpu.pipeline_mode<synchronous>, transform_indices = @transform_5, window_bounds = array<i64: 128, 128>}, {pipeline_mode = #tpu.pipeline_mode<synchronous>, transform_indices = @transform_6, window_bounds = array<i64: 1, 128>}, {pipeline_mode = #tpu.pipeline_mode<synchronous>, transform_indices = @transform_7, window_bounds = array<i64: 128, 128>}, {pipeline_mode = #tpu.pipeline_mode<synchronous>, transform_indices = @transform_8, window_bounds = array<i64: 1, 128>}, {pipeline_mode = #tpu.pipeline_mode<synchronous>, transform_indices = @transform_9, window_bounds = array<i64: 128, 128>}, {pipeline_mode = #tpu.pipeline_mode<synchronous>, transform_indices = @transform_10, window_bounds = array<i64: 1, 128>}, {transform_indices = @transform_11, window_bounds = array<i64: 1, 1, 128>}]} {
    %c0 = arith.constant 0 : index
    %c0_0 = arith.constant 0 : index
    %c0_1 = arith.constant 0 : index
    %0 = vector.load %arg1[%c0, %c0_0, %c0_1] : memref<1x18x72xf32, #tpu.memory_space<vmem>>, vector<1x18x72xf32>
    %1 = vector.shape_cast %0 : vector<1x18x72xf32> to vector<18x72xf32>
    %cst = arith.constant 0.000000e+00 : f32
    %2 = vector.broadcast %cst : f32 to vector<16x128xf32>
    %3 = vector.extract_strided_slice %1 {offsets = [0, 0], sizes = [16, 64], strides = [1, 1]} : vector<18x72xf32> to vector<16x64xf32>
    %c0_2 = arith.constant 0 : index
    %c0_3 = arith.constant 0 : index
    %c0_4 = arith.constant 0 : index
    %4 = vector.load %arg2[%c0_2, %c0_3, %c0_4] : memref<9x64x128xf32, #tpu.memory_space<vmem>>, vector<1x64x128xf32>
    %5 = vector.shape_cast %4 : vector<1x64x128xf32> to vector<64x128xf32>
    %cst_5 = arith.constant dense<0.000000e+00> : vector<16x128xf32>
    %6 = tpu.matmul %3, %5, %cst_5 {dimension_numbers = #tpu.dot_dimension_numbers<[1], [0], [0], [1], [0, 0, 1, 1], [], []>} : vector<16x64xf32>, vector<64x128xf32>, vector<16x128xf32> -> vector<16x128xf32>
    %7 = arith.addf %2, %6 : vector<16x128xf32>
    %8 = vector.extract_strided_slice %1 {offsets = [0, 4], sizes = [16, 64], strides = [1, 1]} : vector<18x72xf32> to vector<16x64xf32>
    %c1 = arith.constant 1 : index
    %c0_6 = arith.constant 0 : index
    %c0_7 = arith.constant 0 : index
    %9 = vector.load %arg2[%c1, %c0_6, %c0_7] : memref<9x64x128xf32, #tpu.memory_space<vmem>>, vector<1x64x128xf32>
    %10 = vector.shape_cast %9 : vector<1x64x128xf32> to vector<64x128xf32>
    %cst_8 = arith.constant dense<0.000000e+00> : vector<16x128xf32>
    %11 = tpu.matmul %8, %10, %cst_8 {dimension_numbers = #tpu.dot_dimension_numbers<[1], [0], [0], [1], [0, 0, 1, 1], [], []>} : vector<16x64xf32>, vector<64x128xf32>, vector<16x128xf32> -> vector<16x128xf32>
    %12 = arith.addf %7, %11 : vector<16x128xf32>
    %13 = vector.extract_strided_slice %1 {offsets = [0, 8], sizes = [16, 64], strides = [1, 1]} : vector<18x72xf32> to vector<16x64xf32>
    %c2 = arith.constant 2 : index
    %c0_9 = arith.constant 0 : index
    %c0_10 = arith.constant 0 : index
    %14 = vector.load %arg2[%c2, %c0_9, %c0_10] : memref<9x64x128xf32, #tpu.memory_space<vmem>>, vector<1x64x128xf32>
    %15 = vector.shape_cast %14 : vector<1x64x128xf32> to vector<64x128xf32>
    %cst_11 = arith.constant dense<0.000000e+00> : vector<16x128xf32>
    %16 = tpu.matmul %13, %15, %cst_11 {dimension_numbers = #tpu.dot_dimension_numbers<[1], [0], [0], [1], [0, 0, 1, 1], [], []>} : vector<16x64xf32>, vector<64x128xf32>, vector<16x128xf32> -> vector<16x128xf32>
    %17 = arith.addf %12, %16 : vector<16x128xf32>
    %18 = vector.extract_strided_slice %1 {offsets = [1, 0], sizes = [16, 64], strides = [1, 1]} : vector<18x72xf32> to vector<16x64xf32>
    %c3 = arith.constant 3 : index
    %c0_12 = arith.constant 0 : index
    %c0_13 = arith.constant 0 : index
    %19 = vector.load %arg2[%c3, %c0_12, %c0_13] : memref<9x64x128xf32, #tpu.memory_space<vmem>>, vector<1x64x128xf32>
    %20 = vector.shape_cast %19 : vector<1x64x128xf32> to vector<64x128xf32>
    %cst_14 = arith.constant dense<0.000000e+00> : vector<16x128xf32>
    %21 = tpu.matmul %18, %20, %cst_14 {dimension_numbers = #tpu.dot_dimension_numbers<[1], [0], [0], [1], [0, 0, 1, 1], [], []>} : vector<16x64xf32>, vector<64x128xf32>, vector<16x128xf32> -> vector<16x128xf32>
    %22 = arith.addf %17, %21 : vector<16x128xf32>
    %23 = vector.extract_strided_slice %1 {offsets = [1, 4], sizes = [16, 64], strides = [1, 1]} : vector<18x72xf32> to vector<16x64xf32>
    %c4 = arith.constant 4 : index
    %c0_15 = arith.constant 0 : index
    %c0_16 = arith.constant 0 : index
    %24 = vector.load %arg2[%c4, %c0_15, %c0_16] : memref<9x64x128xf32, #tpu.memory_space<vmem>>, vector<1x64x128xf32>
    %25 = vector.shape_cast %24 : vector<1x64x128xf32> to vector<64x128xf32>
    %cst_17 = arith.constant dense<0.000000e+00> : vector<16x128xf32>
    %26 = tpu.matmul %23, %25, %cst_17 {dimension_numbers = #tpu.dot_dimension_numbers<[1], [0], [0], [1], [0, 0, 1, 1], [], []>} : vector<16x64xf32>, vector<64x128xf32>, vector<16x128xf32> -> vector<16x128xf32>
    %27 = arith.addf %22, %26 : vector<16x128xf32>
    %28 = vector.extract_strided_slice %1 {offsets = [1, 8], sizes = [16, 64], strides = [1, 1]} : vector<18x72xf32> to vector<16x64xf32>
    %c5 = arith.constant 5 : index
    %c0_18 = arith.constant 0 : index
    %c0_19 = arith.constant 0 : index
    %29 = vector.load %arg2[%c5, %c0_18, %c0_19] : memref<9x64x128xf32, #tpu.memory_space<vmem>>, vector<1x64x128xf32>
    %30 = vector.shape_cast %29 : vector<1x64x128xf32> to vector<64x128xf32>
    %cst_20 = arith.constant dense<0.000000e+00> : vector<16x128xf32>
    %31 = tpu.matmul %28, %30, %cst_20 {dimension_numbers = #tpu.dot_dimension_numbers<[1], [0], [0], [1], [0, 0, 1, 1], [], []>} : vector<16x64xf32>, vector<64x128xf32>, vector<16x128xf32> -> vector<16x128xf32>
    %32 = arith.addf %27, %31 : vector<16x128xf32>
    %33 = vector.extract_strided_slice %1 {offsets = [2, 0], sizes = [16, 64], strides = [1, 1]} : vector<18x72xf32> to vector<16x64xf32>
    %c6 = arith.constant 6 : index
    %c0_21 = arith.constant 0 : index
    %c0_22 = arith.constant 0 : index
    %34 = vector.load %arg2[%c6, %c0_21, %c0_22] : memref<9x64x128xf32, #tpu.memory_space<vmem>>, vector<1x64x128xf32>
    %35 = vector.shape_cast %34 : vector<1x64x128xf32> to vector<64x128xf32>
    %cst_23 = arith.constant dense<0.000000e+00> : vector<16x128xf32>
    %36 = tpu.matmul %33, %35, %cst_23 {dimension_numbers = #tpu.dot_dimension_numbers<[1], [0], [0], [1], [0, 0, 1, 1], [], []>} : vector<16x64xf32>, vector<64x128xf32>, vector<16x128xf32> -> vector<16x128xf32>
    %37 = arith.addf %32, %36 : vector<16x128xf32>
    %38 = vector.extract_strided_slice %1 {offsets = [2, 4], sizes = [16, 64], strides = [1, 1]} : vector<18x72xf32> to vector<16x64xf32>
    %c7 = arith.constant 7 : index
    %c0_24 = arith.constant 0 : index
    %c0_25 = arith.constant 0 : index
    %39 = vector.load %arg2[%c7, %c0_24, %c0_25] : memref<9x64x128xf32, #tpu.memory_space<vmem>>, vector<1x64x128xf32>
    %40 = vector.shape_cast %39 : vector<1x64x128xf32> to vector<64x128xf32>
    %cst_26 = arith.constant dense<0.000000e+00> : vector<16x128xf32>
    %41 = tpu.matmul %38, %40, %cst_26 {dimension_numbers = #tpu.dot_dimension_numbers<[1], [0], [0], [1], [0, 0, 1, 1], [], []>} : vector<16x64xf32>, vector<64x128xf32>, vector<16x128xf32> -> vector<16x128xf32>
    %42 = arith.addf %37, %41 : vector<16x128xf32>
    %43 = vector.extract_strided_slice %1 {offsets = [2, 8], sizes = [16, 64], strides = [1, 1]} : vector<18x72xf32> to vector<16x64xf32>
    %c8 = arith.constant 8 : index
    %c0_27 = arith.constant 0 : index
    %c0_28 = arith.constant 0 : index
    %44 = vector.load %arg2[%c8, %c0_27, %c0_28] : memref<9x64x128xf32, #tpu.memory_space<vmem>>, vector<1x64x128xf32>
    %45 = vector.shape_cast %44 : vector<1x64x128xf32> to vector<64x128xf32>
    %cst_29 = arith.constant dense<0.000000e+00> : vector<16x128xf32>
    %46 = tpu.matmul %43, %45, %cst_29 {dimension_numbers = #tpu.dot_dimension_numbers<[1], [0], [0], [1], [0, 0, 1, 1], [], []>} : vector<16x64xf32>, vector<64x128xf32>, vector<16x128xf32> -> vector<16x128xf32>
    %47 = arith.addf %42, %46 : vector<16x128xf32>
    %c0_30 = arith.constant 0 : index
    %c0_31 = arith.constant 0 : index
    %48 = vector.load %arg3[%c0_30, %c0_31] : memref<1x128xf32, #tpu.memory_space<vmem>>, vector<1x128xf32>
    %49 = vector.broadcast %48 : vector<1x128xf32> to vector<16x128xf32>
    %50 = arith.addf %47, %49 : vector<16x128xf32>
    %cst_32 = arith.constant 0.000000e+00 : f32
    %51 = vector.broadcast %cst_32 : f32 to vector<16x128xf32>
    %52 = arith.maximumf %50, %51 : vector<16x128xf32>
    %c0_33 = arith.constant 0 : index
    %c0_34 = arith.constant 0 : index
    %53 = vector.load %arg5[%c0_33, %c0_34] : memref<1x128xf32, #tpu.memory_space<vmem>>, vector<1x128xf32>
    %54 = vector.extract_strided_slice %52 {offsets = [0, 0], sizes = [1, 128], strides = [1, 1]} : vector<16x128xf32> to vector<1x128xf32>
    %c0_35 = arith.constant 0 : index
    %c0_36 = arith.constant 0 : index
    %c0_37 = arith.constant 0 : index
    %55 = vector.load %arg4[%c0_35, %c0_36, %c0_37] : memref<16x128x128xf32, #tpu.memory_space<vmem>>, vector<1x128x128xf32>
    %56 = vector.shape_cast %55 : vector<1x128x128xf32> to vector<128x128xf32>
    %cst_38 = arith.constant dense<0.000000e+00> : vector<1x128xf32>
    %57 = tpu.matmul %54, %56, %cst_38 {dimension_numbers = #tpu.dot_dimension_numbers<[1], [0], [0], [1], [0, 0, 1, 1], [], []>} : vector<1x128xf32>, vector<128x128xf32>, vector<1x128xf32> -> vector<1x128xf32>
    %58 = arith.addf %53, %57 : vector<1x128xf32>
    %59 = vector.extract_strided_slice %52 {offsets = [1, 0], sizes = [1, 128], strides = [1, 1]} : vector<16x128xf32> to vector<1x128xf32>
    %c1_39 = arith.constant 1 : index
    %c0_40 = arith.constant 0 : index
    %c0_41 = arith.constant 0 : index
    %60 = vector.load %arg4[%c1_39, %c0_40, %c0_41] : memref<16x128x128xf32, #tpu.memory_space<vmem>>, vector<1x128x128xf32>
    %61 = vector.shape_cast %60 : vector<1x128x128xf32> to vector<128x128xf32>
    %cst_42 = arith.constant dense<0.000000e+00> : vector<1x128xf32>
    %62 = tpu.matmul %59, %61, %cst_42 {dimension_numbers = #tpu.dot_dimension_numbers<[1], [0], [0], [1], [0, 0, 1, 1], [], []>} : vector<1x128xf32>, vector<128x128xf32>, vector<1x128xf32> -> vector<1x128xf32>
    %63 = arith.addf %58, %62 : vector<1x128xf32>
    %64 = vector.extract_strided_slice %52 {offsets = [2, 0], sizes = [1, 128], strides = [1, 1]} : vector<16x128xf32> to vector<1x128xf32>
    %c2_43 = arith.constant 2 : index
    %c0_44 = arith.constant 0 : index
    %c0_45 = arith.constant 0 : index
    %65 = vector.load %arg4[%c2_43, %c0_44, %c0_45] : memref<16x128x128xf32, #tpu.memory_space<vmem>>, vector<1x128x128xf32>
    %66 = vector.shape_cast %65 : vector<1x128x128xf32> to vector<128x128xf32>
    %cst_46 = arith.constant dense<0.000000e+00> : vector<1x128xf32>
    %67 = tpu.matmul %64, %66, %cst_46 {dimension_numbers = #tpu.dot_dimension_numbers<[1], [0], [0], [1], [0, 0, 1, 1], [], []>} : vector<1x128xf32>, vector<128x128xf32>, vector<1x128xf32> -> vector<1x128xf32>
    %68 = arith.addf %63, %67 : vector<1x128xf32>
    %69 = vector.extract_strided_slice %52 {offsets = [3, 0], sizes = [1, 128], strides = [1, 1]} : vector<16x128xf32> to vector<1x128xf32>
    %c3_47 = arith.constant 3 : index
    %c0_48 = arith.constant 0 : index
    %c0_49 = arith.constant 0 : index
    %70 = vector.load %arg4[%c3_47, %c0_48, %c0_49] : memref<16x128x128xf32, #tpu.memory_space<vmem>>, vector<1x128x128xf32>
    %71 = vector.shape_cast %70 : vector<1x128x128xf32> to vector<128x128xf32>
    %cst_50 = arith.constant dense<0.000000e+00> : vector<1x128xf32>
    %72 = tpu.matmul %69, %71, %cst_50 {dimension_numbers = #tpu.dot_dimension_numbers<[1], [0], [0], [1], [0, 0, 1, 1], [], []>} : vector<1x128xf32>, vector<128x128xf32>, vector<1x128xf32> -> vector<1x128xf32>
    %73 = arith.addf %68, %72 : vector<1x128xf32>
    %74 = vector.extract_strided_slice %52 {offsets = [4, 0], sizes = [1, 128], strides = [1, 1]} : vector<16x128xf32> to vector<1x128xf32>
    %c4_51 = arith.constant 4 : index
    %c0_52 = arith.constant 0 : index
    %c0_53 = arith.constant 0 : index
    %75 = vector.load %arg4[%c4_51, %c0_52, %c0_53] : memref<16x128x128xf32, #tpu.memory_space<vmem>>, vector<1x128x128xf32>
    %76 = vector.shape_cast %75 : vector<1x128x128xf32> to vector<128x128xf32>
    %cst_54 = arith.constant dense<0.000000e+00> : vector<1x128xf32>
    %77 = tpu.matmul %74, %76, %cst_54 {dimension_numbers = #tpu.dot_dimension_numbers<[1], [0], [0], [1], [0, 0, 1, 1], [], []>} : vector<1x128xf32>, vector<128x128xf32>, vector<1x128xf32> -> vector<1x128xf32>
    %78 = arith.addf %73, %77 : vector<1x128xf32>
    %79 = vector.extract_strided_slice %52 {offsets = [5, 0], sizes = [1, 128], strides = [1, 1]} : vector<16x128xf32> to vector<1x128xf32>
    %c5_55 = arith.constant 5 : index
    %c0_56 = arith.constant 0 : index
    %c0_57 = arith.constant 0 : index
    %80 = vector.load %arg4[%c5_55, %c0_56, %c0_57] : memref<16x128x128xf32, #tpu.memory_space<vmem>>, vector<1x128x128xf32>
    %81 = vector.shape_cast %80 : vector<1x128x128xf32> to vector<128x128xf32>
    %cst_58 = arith.constant dense<0.000000e+00> : vector<1x128xf32>
    %82 = tpu.matmul %79, %81, %cst_58 {dimension_numbers = #tpu.dot_dimension_numbers<[1], [0], [0], [1], [0, 0, 1, 1], [], []>} : vector<1x128xf32>, vector<128x128xf32>, vector<1x128xf32> -> vector<1x128xf32>
    %83 = arith.addf %78, %82 : vector<1x128xf32>
    %84 = vector.extract_strided_slice %52 {offsets = [6, 0], sizes = [1, 128], strides = [1, 1]} : vector<16x128xf32> to vector<1x128xf32>
    %c6_59 = arith.constant 6 : index
    %c0_60 = arith.constant 0 : index
    %c0_61 = arith.constant 0 : index
    %85 = vector.load %arg4[%c6_59, %c0_60, %c0_61] : memref<16x128x128xf32, #tpu.memory_space<vmem>>, vector<1x128x128xf32>
    %86 = vector.shape_cast %85 : vector<1x128x128xf32> to vector<128x128xf32>
    %cst_62 = arith.constant dense<0.000000e+00> : vector<1x128xf32>
    %87 = tpu.matmul %84, %86, %cst_62 {dimension_numbers = #tpu.dot_dimension_numbers<[1], [0], [0], [1], [0, 0, 1, 1], [], []>} : vector<1x128xf32>, vector<128x128xf32>, vector<1x128xf32> -> vector<1x128xf32>
    %88 = arith.addf %83, %87 : vector<1x128xf32>
    %89 = vector.extract_strided_slice %52 {offsets = [7, 0], sizes = [1, 128], strides = [1, 1]} : vector<16x128xf32> to vector<1x128xf32>
    %c7_63 = arith.constant 7 : index
    %c0_64 = arith.constant 0 : index
    %c0_65 = arith.constant 0 : index
    %90 = vector.load %arg4[%c7_63, %c0_64, %c0_65] : memref<16x128x128xf32, #tpu.memory_space<vmem>>, vector<1x128x128xf32>
    %91 = vector.shape_cast %90 : vector<1x128x128xf32> to vector<128x128xf32>
    %cst_66 = arith.constant dense<0.000000e+00> : vector<1x128xf32>
    %92 = tpu.matmul %89, %91, %cst_66 {dimension_numbers = #tpu.dot_dimension_numbers<[1], [0], [0], [1], [0, 0, 1, 1], [], []>} : vector<1x128xf32>, vector<128x128xf32>, vector<1x128xf32> -> vector<1x128xf32>
    %93 = arith.addf %88, %92 : vector<1x128xf32>
    %94 = vector.extract_strided_slice %52 {offsets = [8, 0], sizes = [1, 128], strides = [1, 1]} : vector<16x128xf32> to vector<1x128xf32>
    %c8_67 = arith.constant 8 : index
    %c0_68 = arith.constant 0 : index
    %c0_69 = arith.constant 0 : index
    %95 = vector.load %arg4[%c8_67, %c0_68, %c0_69] : memref<16x128x128xf32, #tpu.memory_space<vmem>>, vector<1x128x128xf32>
    %96 = vector.shape_cast %95 : vector<1x128x128xf32> to vector<128x128xf32>
    %cst_70 = arith.constant dense<0.000000e+00> : vector<1x128xf32>
    %97 = tpu.matmul %94, %96, %cst_70 {dimension_numbers = #tpu.dot_dimension_numbers<[1], [0], [0], [1], [0, 0, 1, 1], [], []>} : vector<1x128xf32>, vector<128x128xf32>, vector<1x128xf32> -> vector<1x128xf32>
    %98 = arith.addf %93, %97 : vector<1x128xf32>
    %99 = vector.extract_strided_slice %52 {offsets = [9, 0], sizes = [1, 128], strides = [1, 1]} : vector<16x128xf32> to vector<1x128xf32>
    %c9 = arith.constant 9 : index
    %c0_71 = arith.constant 0 : index
    %c0_72 = arith.constant 0 : index
    %100 = vector.load %arg4[%c9, %c0_71, %c0_72] : memref<16x128x128xf32, #tpu.memory_space<vmem>>, vector<1x128x128xf32>
    %101 = vector.shape_cast %100 : vector<1x128x128xf32> to vector<128x128xf32>
    %cst_73 = arith.constant dense<0.000000e+00> : vector<1x128xf32>
    %102 = tpu.matmul %99, %101, %cst_73 {dimension_numbers = #tpu.dot_dimension_numbers<[1], [0], [0], [1], [0, 0, 1, 1], [], []>} : vector<1x128xf32>, vector<128x128xf32>, vector<1x128xf32> -> vector<1x128xf32>
    %103 = arith.addf %98, %102 : vector<1x128xf32>
    %104 = vector.extract_strided_slice %52 {offsets = [10, 0], sizes = [1, 128], strides = [1, 1]} : vector<16x128xf32> to vector<1x128xf32>
    %c10 = arith.constant 10 : index
    %c0_74 = arith.constant 0 : index
    %c0_75 = arith.constant 0 : index
    %105 = vector.load %arg4[%c10, %c0_74, %c0_75] : memref<16x128x128xf32, #tpu.memory_space<vmem>>, vector<1x128x128xf32>
    %106 = vector.shape_cast %105 : vector<1x128x128xf32> to vector<128x128xf32>
    %cst_76 = arith.constant dense<0.000000e+00> : vector<1x128xf32>
    %107 = tpu.matmul %104, %106, %cst_76 {dimension_numbers = #tpu.dot_dimension_numbers<[1], [0], [0], [1], [0, 0, 1, 1], [], []>} : vector<1x128xf32>, vector<128x128xf32>, vector<1x128xf32> -> vector<1x128xf32>
    %108 = arith.addf %103, %107 : vector<1x128xf32>
    %109 = vector.extract_strided_slice %52 {offsets = [11, 0], sizes = [1, 128], strides = [1, 1]} : vector<16x128xf32> to vector<1x128xf32>
    %c11 = arith.constant 11 : index
    %c0_77 = arith.constant 0 : index
    %c0_78 = arith.constant 0 : index
    %110 = vector.load %arg4[%c11, %c0_77, %c0_78] : memref<16x128x128xf32, #tpu.memory_space<vmem>>, vector<1x128x128xf32>
    %111 = vector.shape_cast %110 : vector<1x128x128xf32> to vector<128x128xf32>
    %cst_79 = arith.constant dense<0.000000e+00> : vector<1x128xf32>
    %112 = tpu.matmul %109, %111, %cst_79 {dimension_numbers = #tpu.dot_dimension_numbers<[1], [0], [0], [1], [0, 0, 1, 1], [], []>} : vector<1x128xf32>, vector<128x128xf32>, vector<1x128xf32> -> vector<1x128xf32>
    %113 = arith.addf %108, %112 : vector<1x128xf32>
    %114 = vector.extract_strided_slice %52 {offsets = [12, 0], sizes = [1, 128], strides = [1, 1]} : vector<16x128xf32> to vector<1x128xf32>
    %c12 = arith.constant 12 : index
    %c0_80 = arith.constant 0 : index
    %c0_81 = arith.constant 0 : index
    %115 = vector.load %arg4[%c12, %c0_80, %c0_81] : memref<16x128x128xf32, #tpu.memory_space<vmem>>, vector<1x128x128xf32>
    %116 = vector.shape_cast %115 : vector<1x128x128xf32> to vector<128x128xf32>
    %cst_82 = arith.constant dense<0.000000e+00> : vector<1x128xf32>
    %117 = tpu.matmul %114, %116, %cst_82 {dimension_numbers = #tpu.dot_dimension_numbers<[1], [0], [0], [1], [0, 0, 1, 1], [], []>} : vector<1x128xf32>, vector<128x128xf32>, vector<1x128xf32> -> vector<1x128xf32>
    %118 = arith.addf %113, %117 : vector<1x128xf32>
    %119 = vector.extract_strided_slice %52 {offsets = [13, 0], sizes = [1, 128], strides = [1, 1]} : vector<16x128xf32> to vector<1x128xf32>
    %c13 = arith.constant 13 : index
    %c0_83 = arith.constant 0 : index
    %c0_84 = arith.constant 0 : index
    %120 = vector.load %arg4[%c13, %c0_83, %c0_84] : memref<16x128x128xf32, #tpu.memory_space<vmem>>, vector<1x128x128xf32>
    %121 = vector.shape_cast %120 : vector<1x128x128xf32> to vector<128x128xf32>
    %cst_85 = arith.constant dense<0.000000e+00> : vector<1x128xf32>
    %122 = tpu.matmul %119, %121, %cst_85 {dimension_numbers = #tpu.dot_dimension_numbers<[1], [0], [0], [1], [0, 0, 1, 1], [], []>} : vector<1x128xf32>, vector<128x128xf32>, vector<1x128xf32> -> vector<1x128xf32>
    %123 = arith.addf %118, %122 : vector<1x128xf32>
    %124 = vector.extract_strided_slice %52 {offsets = [14, 0], sizes = [1, 128], strides = [1, 1]} : vector<16x128xf32> to vector<1x128xf32>
    %c14 = arith.constant 14 : index
    %c0_86 = arith.constant 0 : index
    %c0_87 = arith.constant 0 : index
    %125 = vector.load %arg4[%c14, %c0_86, %c0_87] : memref<16x128x128xf32, #tpu.memory_space<vmem>>, vector<1x128x128xf32>
    %126 = vector.shape_cast %125 : vector<1x128x128xf32> to vector<128x128xf32>
    %cst_88 = arith.constant dense<0.000000e+00> : vector<1x128xf32>
    %127 = tpu.matmul %124, %126, %cst_88 {dimension_numbers = #tpu.dot_dimension_numbers<[1], [0], [0], [1], [0, 0, 1, 1], [], []>} : vector<1x128xf32>, vector<128x128xf32>, vector<1x128xf32> -> vector<1x128xf32>
    %128 = arith.addf %123, %127 : vector<1x128xf32>
    %129 = vector.extract_strided_slice %52 {offsets = [15, 0], sizes = [1, 128], strides = [1, 1]} : vector<16x128xf32> to vector<1x128xf32>
    %c15 = arith.constant 15 : index
    %c0_89 = arith.constant 0 : index
    %c0_90 = arith.constant 0 : index
    %130 = vector.load %arg4[%c15, %c0_89, %c0_90] : memref<16x128x128xf32, #tpu.memory_space<vmem>>, vector<1x128x128xf32>
    %131 = vector.shape_cast %130 : vector<1x128x128xf32> to vector<128x128xf32>
    %cst_91 = arith.constant dense<0.000000e+00> : vector<1x128xf32>
    %132 = tpu.matmul %129, %131, %cst_91 {dimension_numbers = #tpu.dot_dimension_numbers<[1], [0], [0], [1], [0, 0, 1, 1], [], []>} : vector<1x128xf32>, vector<128x128xf32>, vector<1x128xf32> -> vector<1x128xf32>
    %133 = arith.addf %128, %132 : vector<1x128xf32>
    %cst_92 = arith.constant 0.000000e+00 : f32
    %134 = vector.broadcast %cst_92 : f32 to vector<1x128xf32>
    %135 = arith.maximumf %133, %134 : vector<1x128xf32>
    %c0_93 = arith.constant 0 : index
    %c0_94 = arith.constant 0 : index
    %136 = vector.load %arg6[%c0_93, %c0_94] : memref<128x128xf32, #tpu.memory_space<vmem>>, vector<128x128xf32>
    %cst_95 = arith.constant dense<0.000000e+00> : vector<1x128xf32>
    %137 = tpu.matmul %135, %136, %cst_95 {dimension_numbers = #tpu.dot_dimension_numbers<[1], [0], [0], [1], [0, 0, 1, 1], [], []>} : vector<1x128xf32>, vector<128x128xf32>, vector<1x128xf32> -> vector<1x128xf32>
    %c0_96 = arith.constant 0 : index
    %c0_97 = arith.constant 0 : index
    %138 = vector.load %arg7[%c0_96, %c0_97] : memref<1x128xf32, #tpu.memory_space<vmem>>, vector<1x128xf32>
    %139 = arith.addf %137, %138 : vector<1x128xf32>
    %c0_98 = arith.constant 0 : index
    %c0_99 = arith.constant 0 : index
    %140 = vector.load %arg8[%c0_98, %c0_99] : memref<128x128xf32, #tpu.memory_space<vmem>>, vector<128x128xf32>
    %cst_100 = arith.constant dense<0.000000e+00> : vector<1x128xf32>
    %141 = tpu.matmul %139, %140, %cst_100 {dimension_numbers = #tpu.dot_dimension_numbers<[1], [0], [0], [1], [0, 0, 1, 1], [], []>} : vector<1x128xf32>, vector<128x128xf32>, vector<1x128xf32> -> vector<1x128xf32>
    %c0_101 = arith.constant 0 : index
    %c0_102 = arith.constant 0 : index
    %142 = vector.load %arg9[%c0_101, %c0_102] : memref<1x128xf32, #tpu.memory_space<vmem>>, vector<1x128xf32>
    %143 = arith.addf %141, %142 : vector<1x128xf32>
    %cst_103 = arith.constant 0.000000e+00 : f32
    %144 = vector.broadcast %cst_103 : f32 to vector<1x128xf32>
    %145 = arith.maximumf %143, %144 : vector<1x128xf32>
    %c0_104 = arith.constant 0 : index
    %c0_105 = arith.constant 0 : index
    %146 = vector.load %arg10[%c0_104, %c0_105] : memref<128x128xf32, #tpu.memory_space<vmem>>, vector<128x128xf32>
    %cst_106 = arith.constant dense<0.000000e+00> : vector<1x128xf32>
    %147 = tpu.matmul %145, %146, %cst_106 {dimension_numbers = #tpu.dot_dimension_numbers<[1], [0], [0], [1], [0, 0, 1, 1], [], []>} : vector<1x128xf32>, vector<128x128xf32>, vector<1x128xf32> -> vector<1x128xf32>
    %c0_107 = arith.constant 0 : index
    %c0_108 = arith.constant 0 : index
    %148 = vector.load %arg11[%c0_107, %c0_108] : memref<1x128xf32, #tpu.memory_space<vmem>>, vector<1x128xf32>
    %149 = arith.addf %147, %148 : vector<1x128xf32>
    %c0_109 = arith.constant 0 : index
    %c0_110 = arith.constant 0 : index
    %c0_111 = arith.constant 0 : index
    %150 = vector.load %arg12[%c0_109, %c0_110, %c0_111] : memref<1x1x128xf32, #tpu.memory_space<vmem>>, vector<1x1x128xf32>
    %151 = vector.shape_cast %150 : vector<1x1x128xf32> to vector<1x128xf32>
    %152 = vector.shape_cast %149 : vector<1x128xf32> to vector<1x1x128xf32>
    tpu.vector_store %arg12[%c0_109, %c0_110, %c0_111], %152 {strides = array<i32>} : memref<1x1x128xf32, #tpu.memory_space<vmem>>, vector<1x1x128xf32>,
    return
  }
  func.func @transform_0(%arg0: i32) -> (i32, i32, i32) {
    %c0_i32 = arith.constant 0 : i32
    %c0_i32_0 = arith.constant 0 : i32
    %c0_i32_1 = arith.constant 0 : i32
    return %arg0, %c0_i32, %c0_i32_0 : i32, i32, i32
  }
  func.func @transform_1(%arg0: i32) -> (i32, i32, i32) {
    %c0_i32 = arith.constant 0 : i32
    %c0_i32_0 = arith.constant 0 : i32
    %c0_i32_1 = arith.constant 0 : i32
    %c0_i32_2 = arith.constant 0 : i32
    return %c0_i32, %c0_i32_0, %c0_i32_1 : i32, i32, i32
  }
  func.func @transform_2(%arg0: i32) -> (i32, i32) {
    %c0_i32 = arith.constant 0 : i32
    %c0_i32_0 = arith.constant 0 : i32
    %c0_i32_1 = arith.constant 0 : i32
    return %c0_i32, %c0_i32_0 : i32, i32
  }
  func.func @transform_3(%arg0: i32) -> (i32, i32, i32) {
    %c0_i32 = arith.constant 0 : i32
    %c0_i32_0 = arith.constant 0 : i32
    %c0_i32_1 = arith.constant 0 : i32
    %c0_i32_2 = arith.constant 0 : i32
    return %c0_i32, %c0_i32_0, %c0_i32_1 : i32, i32, i32
  }
  func.func @transform_4(%arg0: i32) -> (i32, i32) {
    %c0_i32 = arith.constant 0 : i32
    %c0_i32_0 = arith.constant 0 : i32
    %c0_i32_1 = arith.constant 0 : i32
    return %c0_i32, %c0_i32_0 : i32, i32
  }
  func.func @transform_5(%arg0: i32) -> (i32, i32) {
    %c0_i32 = arith.constant 0 : i32
    %c0_i32_0 = arith.constant 0 : i32
    %c0_i32_1 = arith.constant 0 : i32
    return %c0_i32, %c0_i32_0 : i32, i32
  }
  func.func @transform_6(%arg0: i32) -> (i32, i32) {
    %c0_i32 = arith.constant 0 : i32
    %c0_i32_0 = arith.constant 0 : i32
    %c0_i32_1 = arith.constant 0 : i32
    return %c0_i32, %c0_i32_0 : i32, i32
  }
  func.func @transform_7(%arg0: i32) -> (i32, i32) {
    %c0_i32 = arith.constant 0 : i32
    %c0_i32_0 = arith.constant 0 : i32
    %c0_i32_1 = arith.constant 0 : i32
    return %c0_i32, %c0_i32_0 : i32, i32
  }
  func.func @transform_8(%arg0: i32) -> (i32, i32) {
    %c0_i32 = arith.constant 0 : i32
    %c0_i32_0 = arith.constant 0 : i32
    %c0_i32_1 = arith.constant 0 : i32
    return %c0_i32, %c0_i32_0 : i32, i32
  }
  func.func @transform_9(%arg0: i32) -> (i32, i32) {
    %c0_i32 = arith.constant 0 : i32
    %c0_i32_0 = arith.constant 0 : i32
    %c0_i32_1 = arith.constant 0 : i32
    return %c0_i32, %c0_i32_0 : i32, i32
  }
  func.func @transform_10(%arg0: i32) -> (i32, i32) {
    %c0_i32 = arith.constant 0 : i32
    %c0_i32_0 = arith.constant 0 : i32
    %c0_i32_1 = arith.constant 0 : i32
    return %c0_i32, %c0_i32_0 : i32, i32
  }
  func.func @transform_11(%arg0: i32) -> (i32, i32, i32) {
    %c0_i32 = arith.constant 0 : i32
    %c0_i32_0 = arith.constant 0 : i32
    %c0_i32_1 = arith.constant 0 : i32
    return %arg0, %c0_i32, %c0_i32_0 : i32, i32, i32
  }
}

</mosaic_0001>

<bundles_post_ra>
// kernel: network_forward.1
= control target key start
LH: loop header
LB: loop body
LE: loop exit
PB: predicated region body
PF: predicated region fallthrough
CT: control target
= control target key end

     0   :  { %s6153_s0 = inlined_call_operand.vmem [shape: f32[2,18,72], index: 0, kind: input, shape index: {}]   ;;  %s6154_s1 = inlined_call_operand.vmem [shape: f32[9,64,128], index: 1, kind: input, shape index: {}]   ;;  %s6155_s2 = inlined_call_operand.vmem [shape: f32[1,128], index: 2, kind: input, shape index: {}]   ;;  %s6156_s3 = inlined_call_operand.hbm [shape: f32[16,128,128], index: 3, kind: input, shape index: {}]   ;;  %s6157_s4 = inlined_call_operand.vmem [shape: f32[1,128], index: 4, kind: input, shape index: {}]   ;;  %s6158_s5 = inlined_call_operand.vmem [shape: f32[128,128], index: 5, kind: input, shape index: {}]   ;;  %s6159_s6 = inlined_call_operand.vmem [shape: f32[1,128], index: 6, kind: input, shape index: {}]   ;;  %s6160_s7 = inlined_call_operand.hbm [shape: f32[128,128], index: 7, kind: input, shape index: {}]   ;;  %s6161_s8 = inlined_call_operand.vmem [shape: f32[1,128], index: 8, kind: input, shape index: {}]   ;;  %s6162_s9 = inlined_call_operand.hbm [shape: f32[128,128], index: 9, kind: input, shape index: {}]   ;;  %s6163_s10 = inlined_call_operand.vmem [shape: f32[1,128], index: 10, kind: input, shape index: {}]   ;;  %s6164_s11 = inlined_call_operand.hbm [shape: f32[2,1,128], index: 11, kind: output, shape index: {}]  }
   0x1   :  { %6175 = sst [smem:[#allocation18_spill]] %s6164_s11 }
   0x2   :  { %16 = vsyncpa [#allocation3], 0 }
   0x3   :  { %17 = vsyncpa [#allocation6], 0 }
   0x4   :  { %18 = vsyncpa [#allocation4], 0 }
   0x5   :  { %20 = vsyncpa [#allocation4 + $0x1], 0  ;;  %s5385_s17 = smov 0   ;;  %s5387_s18 = smov 0  }
   0x6   :  { %s5389_s19 = smov 0   ;;  %s5391_s20 = smov 0  }
   0x7 LB: > { %6176 = sst [smem:[#allocation12_spill]] %s5300_s17  ;;  %s5406_s21 = sadd.s32 4294967295, %s5312_s20   ;;  %s5312_s20 = sphi %s5391_s20, %s6198_s20   ;;  %s5308_s19 = sphi %s5389_s19, %s6200_s19   ;;  %s5304_s18 = sphi %s5387_s18, %s6202_s18   ;;  %s5300_s17 = sphi %s5385_s17, %s6201_s17  }
   0x8   : > { %6177 = sst [smem:[#allocation13_spill]] %s5308_s19  ;;  %s3088_s22 = sadd.s32 4294967294, %s5312_s20  }
   0x9   : > { %6178 = sst [smem:[#allocation14_spill]] %s5312_s20  ;;  %s5410_s23 = sadd.s32 1, %s5312_s20  }
   0xa   : > { %6179 = sst [smem:[#allocation15_spill]] %s5410_s23  ;;  %s269_s24 = sadd.s32 1, %s5308_s19 }
   0xb   : > { %s266_s25 = ssub.s32 %s5312_s20, %s5410_s23  ;;  %p279_p0 = scmp.ne.s32.totalorder %s5308_s19, %s5304_s18 }
   0xc   : > { %p267_p1 = scmp.eq.s32.totalorder %s266_s25, 0  ;;  %p280_p2 = scmp.eq.s32.totalorder %s5406_s21, 1 }
   0xd   : > { %p285_p3 = scmp.ne.s32.totalorder %s5304_s18, %s5300_s17  ;;  %p286_p4 = scmp.eq.s32.totalorder %s3088_s22, 1 }
   0xe   : > { %s5421_s26 = scalar_select %p267_p1, %s5308_s19, %s269_s24  }
   0xf   : > { %p5423_p5 = por %p280_p2, %p279_p0  ;;  %p5427_p6 = por %p286_p4, %p285_p3 }
  0x10   : > { %6180 = sst [smem:[#allocation16_spill]] %s5421_s26  ;;  %p3089_p7 = scmp.ge.s32.totalorder %s5312_s20, 1 }
  0x11   : > { %s6181_s27 = scalar_select %p5423_p5, 1, 0 }
  0x12   : > { %s6182_s28 = scalar_select %p5427_p6, 1, 0 }
  0x13   : > { %p293_p8 = scmp.lt.s32.totalorder %s5312_s20, 3  ;;  %p6168_p9 = scmp.eq.s32.totalorder %s5406_s21, 0 }
  0x14   : > { %6183 = sst [smem:[#allocation17_spill]] %s6182_s28  ;;  %s5314_s30 = smov [#allocation5]  }
  0x15   : > { %p5434_p10 = pnand %p3089_p7, %p293_p8  ;;  %s333_s12 = sshll.u32 %s5314_s30, 4  ;;  %s5440_s12 = int_to_ptr.vmem [resolvable:$true] %s333_s12 }
  0x16   : > { %s5315_s14 = smov [#allocation2]   ;;  %s5316_s16 = smov [#allocation7]  }
  0x17   : > { %s6184_s29 = scalar_select %p5434_p10, 1, 0 }
  0x18   : > { %p5095_p11 = pneg %p5434_p10  ;;  %s311_s15 = sshll.u32 %s5315_s14, 4  ;;  %s5448_s15 = int_to_ptr.vmem [resolvable:$true] %s311_s15 }
  0x19   : > { %s5450_s22 = sshll.u32 %s5316_s16, 4  ;;  %s5158_s26 = scalar_lea.hbm %s6160_s7, 2048  ;;  %s350_s22 = int_to_ptr.vmem [resolvable:$true] %s5450_s22 }
  0x1a   : > { %p5444_p12 = pnand %p6168_p9, %p5095_p11  ;;  %p5159_p13 = scmp.ne.s32.totalorder %s6160_s7, %s5158_s26 }
  0x1b   : > { %p5165_p3 = scmp.lt.u32.totalorder %s5158_s26, %s6160_s7 }
  0x1c   : > { %p5460_p0 = pneg %p5444_p12 }
  0x1e   : > { %p5161_p1 = pnand %p5460_p0, %p5159_p13 }
  0x20   : > { %p5162_p2 = pneg %p5161_p1 }
  0x22   : > { %p5167_p4 = pnand %p5165_p3, %p5162_p2 }
  0x24   : > { %5170 = shalt.err (!%p5167_p4)
}
  0x25   : > { %s5171_s19 = scalar_lea.vmem %s5440_s12, 2048  ;;  %p5179_p9 = scmp.lt.s32.totalorder %s5440_s12, %s5440_s12 }
  0x26   : > { %p5172_p7 = scmp.ne.s32.totalorder %s5440_s12, %s5171_s19  ;;  %p5180_p6 = scmp.lt.s32.totalorder %s5171_s19, %s5171_s19 }
  0x28   : > { %p5174_p8 = pnand %p5172_p7, %p5460_p0  ;;  %p5181_p13 = por %p5180_p6, %p5179_p9 }
  0x2a   : > { %p5175_p11 = pneg %p5174_p8 }
  0x2c   : > { %p5182_p1 = pnand %p5181_p13, %p5175_p11 }
  0x2e   : > { %5185 = shalt.err (!%p5182_p1)
}
  0x2f   : > { %s5317_s24 = smov 128   ;;  %s5318_s26 = smov 8  }
  0x30   : > { %5101 = dma.hbm_to_vmem [thread:$0]  (!%p5444_p12), %s6160_s7, 2048, %s5440_s12, [#allocation6], %s5317_s24, %s5317_s24, %s5318_s26  }
  0x31   : > { %s5186_s19 = scalar_lea.hbm %s6156_s3, 32768 }
  0x32   : > { %p5187_p6 = scmp.ne.s32.totalorder %s6156_s3, %s5186_s19  ;;  %p5193_p3 = scmp.lt.u32.totalorder %s5186_s19, %s6156_s3 }
  0x34   : > { %p5189_p9 = pnand %p5187_p6, %p5460_p0 }
  0x36   : > { %p5190_p2 = pneg %p5189_p9 }
  0x38   : > { %p5195_p4 = pnand %p5193_p3, %p5190_p2 }
  0x3a   : > { %5198 = shalt.err (!%p5195_p4)
}
  0x3b   : > { %s5199_s12 = scalar_lea.vmem %s5448_s15, 32768  ;;  %p5207_p13 = scmp.lt.s32.totalorder %s5448_s15, %s5448_s15 }
  0x3c   : > { %p5200_p7 = scmp.ne.s32.totalorder %s5448_s15, %s5199_s12  ;;  %p5208_p1 = scmp.lt.s32.totalorder %s5199_s12, %s5199_s12 }
  0x3e   : > { %p5202_p8 = pnand %p5200_p7, %p5460_p0  ;;  %p5209_p6 = por %p5208_p1, %p5207_p13 }
  0x40   : > { %p5203_p11 = pneg %p5202_p8 }
  0x42   : > { %p5210_p9 = pnand %p5209_p6, %p5203_p11 }
  0x44   : > { %5213 = shalt.err (!%p5210_p9)
}
  0x45   : > { %5098 = dma.hbm_to_vmem [thread:$0]  (!%p5444_p12), %s6156_s3, 32768, %s5448_s15, [#allocation3], %s5317_s24, %s5317_s24, %s5318_s26  }
  0x46   : > { %s5214_s25 = scalar_lea.hbm %s6162_s9, 2048 }
  0x47   : > { %p5215_p2 = scmp.ne.s32.totalorder %s6162_s9, %s5214_s25  ;;  %p5221_p7 = scmp.lt.u32.totalorder %s5214_s25, %s6162_s9 }
  0x49   : > { %p5217_p3 = pnand %p5215_p2, %p5460_p0 }
  0x4b   : > { %p5218_p4 = pneg %p5217_p3 }
  0x4d   : > { %p5223_p8 = pnand %p5221_p7, %p5218_p4 }
  0x4f   : > { %5226 = shalt.err (!%p5223_p8)
}
  0x50   : > { %s5227_s12 = scalar_lea.vmem %s350_s22, 2048  ;;  %p5235_p6 = scmp.lt.s32.totalorder %s350_s22, %s350_s22 }
  0x51   : > { %p5228_p11 = scmp.ne.s32.totalorder %s350_s22, %s5227_s12  ;;  %p5236_p9 = scmp.lt.s32.totalorder %s5227_s12, %s5227_s12 }
  0x53   : > { %p5230_p13 = pnand %p5228_p11, %p5460_p0  ;;  %p5237_p5 = por %p5236_p9, %p5235_p6 }
  0x55   : > { %p5231_p1 = pneg %p5230_p13 }
  0x57   : > { %p5238_p10 = pnand %p5237_p5, %p5231_p1 }
  0x59   : > { %5241 = shalt.err (!%p5238_p10)
}
  0x5a   : > { %5104 = dma.hbm_to_vmem [thread:$0]  (!%p5444_p12), %s6162_s9, 2048, %s350_s22, [#allocation6], %s5317_s24, %s5317_s24, %s5318_s26  }
  0x5b   : > { %p6187_p2 = scmp.ne.s32.totalorder %s6184_s29, 0 }
  0x5c   : > { %p6188_p0 = scmp.eq.s32.totalorder (!%p6187_p2), %s5406_s21, 0 }
  0x5d   : > { %376 = sbr.rel (%p6187_p2) target bundleno = 1804 (0x70c), region = 64 }
  0x64   : > { %5287 = dma.done.wait (%p6188_p0), [#allocation3], 32768   ;;  %p6189_p3 = pmov %p6188_p0 }
  0x65   : > { %p6190_p5 = pmov %p6188_p0 }
  0x66   : > { %5289 = vsyncadd (%p6189_p3), [#allocation3], 4294934528 }
  0x67   : > { %5291 = dma.done.wait (%p6190_p5), [#allocation6], 4096   ;;  %p6191_p10 = pmov %p6188_p0 }
  0x68   : > { %p423_p4 = scmp.lt.s32.totalorder %s5406_s21, 1  ;;  %s5319_s26 = smov 124   ;;  %v3099_v3 = vld [vmem:[%s6154_s1 + $0x40] sm:$0xff]  ;;  %v3100_v4 = vld [vmem:[%s6154_s1 + $0x48] sm:$0xff]  ;;  %v3101_v9 = vld [vmem:[%s6154_s1 + $0x50] sm:$0xff]  ;;  %vm717_vm0 = vcmask 1046528  }
  0x69   : > { %5293 = vsyncadd (%p6191_p10), [#allocation6], 4294963200  ;;  %s5320_s17 = smov 120   ;;  %v4434_v8 = vpack.c.bf16 %v3100_v4, %v3099_v3  ;;  %v3102_v10 = vld [vmem:[%s6154_s1 + $0x58] sm:$0xff]  ;;  %v3103_v12 = vld [vmem:[%s6154_s1 + $0x60] sm:$0xff]  ;;  %vm1001_vm1 = vcmask 1045504  }
  0x6a   : > { %s424_s23 = scalar_select %p423_p4, %s5406_s21, 1  ;;  %v4438_v11 = vpack.c.bf16 %v3102_v10, %v3101_v9  ;;  %v3104_v13 = vld [vmem:[%s6154_s1 + $0x68] sm:$0xff]  ;;  %v3105_v17 = vld [vmem:[%s6154_s1 + $0x70] sm:$0xff]  ;;  %v3106_v18 = vld [vmem:[%s6154_s1 + $0x78] sm:$0xff]  ;;  %vm454_vm2 = vcmask 523264   ;;  %v5321_v38 = vmov 0.0|0.0  }
  0x6b   : > { %4435 = vmatprep.subr.bf16.mxu0 %v4434_v8  ;;  %v4442_v16 = vpack.c.bf16 %v3104_v13, %v3103_v12  ;;  %v4446_v22 = vpack.c.bf16 %v3106_v18, %v3105_v17  ;;  %v431_v23 = vld [vmem:[%s6154_s1] sm:$0xff]  ;;  %v432_v24 = vld [vmem:[%s6154_s1 + $0x8] sm:$0xff]  ;;  %v433_v29 = vld [vmem:[%s6154_s1 + $0x10] sm:$0xff]  ;;  %4674 = vmatprep.subr.bf16.mxu1 %v5321_v38  ;;  %vm5322_vm3 = vmmov 0   ;;  %s3182_s25 = sshll.u32 %s5406_s21, 4  ;;  %s6192_s12 = sld [smem:[#allocation18_spill]] }
  0x6c   : > { %s5080_s13 = smul.u32 24, %s424_s23  ;;  %4437 = vmatpush3.bf16.msra.mxu0 %v4434_v8  ;;  %v4450_v27 = vpack.c.bf16 %v432_v24, %v431_v23  ;;  %v434_v30 = vld [vmem:[%s6154_s1 + $0x18] sm:$0xff]  ;;  %v435_v33 = vld [vmem:[%s6154_s1 + $0x20] sm:$0xff]  ;;  %v436_v34 = vld [vmem:[%s6154_s1 + $0x28] sm:$0xff]  ;;  %p6193_p7 = scmp.ne.s32.totalorder %s6181_s27, 0 }
  0x6d   : > { %4439 = vmatprep.subr.bf16.mxu0 %v4438_v11  ;;  %v4454_v31 = vpack.c.bf16 %v434_v30, %v433_v29  ;;  %v1647_v35 = vld [vmem:[#allocation2 + $0x200] sm:$0xff]  ;;  %v1648_v36 = vld [vmem:[#allocation2 + $0x208] sm:$0xff]  ;;  %v4458_v37 = vpack.c.bf16 %v436_v34, %v435_v33  ;;  %v437_v40 = vld [vmem:[%s6154_s1 + $0x30] sm:$0xff]  ;;  %s5324_s21 = smov [#allocation8]  }
  0x6e   : > { %s427_s24 = scalar_lea.vmem %s6153_s0, %s5080_s13  ;;  %v4675_v39 = vpack.c.bf16 %v1648_v36, %v1647_v35  ;;  %v438_v41 = vld [vmem:[%s6154_s1 + $0x38] sm:$0xff]  ;;  %v1649_v42 = vld [vmem:[#allocation2 + $0x210] sm:$0xff]  ;;  %v3111_v46 = vld [vmem:[%s6154_s1 + $0x80] sm:$0xff]  ;;  %s5246_s23 = sshll.u32 %s5324_s21, 4  ;;  %s5247_s23 = int_to_ptr.vmem [resolvable:$false] %s5246_s23 }
  0x6f   : > { %v5547_v0 = vld [vmem:[%s427_s24] sm:$0xff]  ;;  %v5549_v1 = vld [vmem:[%s427_s24 + $0x8] sm:$0xff]  ;;  %v430_v2 = vld [vmem:[%s427_s24 + $0x10] sm:$0x3]  ;;  %v4462_v44 = vpack.c.bf16 %v438_v41, %v437_v40  ;;  %s421_s24 = sand.u32 1, %s5304_s18  }
  0x70   : > { %450 = vrot.lane.b32.xlu0 %v5547_v0, %s5319_s26  ;;  %622 = vrot.lane.b32.xlu1 %v5547_v0, %s5320_s17  ;;  %v718_v5 = vrot.slane %v5547_v0, 1  ;;  %v719_v6 = vrot.slane %v5549_v1, 1  ;;  %v721_v7 = vrot.slane %v430_v2, 1  ;;  %v1002_v19 = vrot.slane %v5547_v0, 2  ;;  %v1650_v43 = vld [vmem:[#allocation2 + $0x218] sm:$0xff]  ;;  %v3112_v47 = vld [vmem:[%s6154_s1 + $0x88] sm:$0xff] }
  0x71   : > { %4441 = vmatpush3.bf16.msra.mxu0 %v4438_v11  ;;  %v1003_v20 = vrot.slane %v5549_v1, 2  ;;  %v1005_v21 = vrot.slane %v430_v2, 2  ;;  %4676 = vmatpush3.bf16.msra.mxu1 %v4675_v39  ;;  %v4678_v45 = vpack.c.bf16 %v1650_v43, %v1649_v42  ;;  %v1651_v48 = vld [vmem:[#allocation2 + $0x220] sm:$0xff]  ;;  %v1652_v49 = vld [vmem:[#allocation2 + $0x228] sm:$0xff]  ;;  %v4466_v50 = vpack.c.bf16 %v3112_v47, %v3111_v46  ;;  %v3113_v52 = vld [vmem:[%s6154_s1 + $0x90] sm:$0xff]  ;;  %s422_s30 = scalar_lea.vmem [#allocation8], %s421_s24  ;;  %s6111_s15 = scalar_lea.hbm %s6192_s12, %s3182_s25 }
  0x72   : > { %v5579_v14 = vsel %vm717_vm0, %v718_v5, %v719_v6  ;;  %v5581_v15 = vsel %vm717_vm0, %v719_v6, %v721_v7  ;;  %4443 = vmatprep.subr.bf16.mxu0 %v4442_v16  ;;  %4677 = vmatprep.subr.bf16.mxu1 %v5321_v38  ;;  %v4681_v51 = vpack.c.bf16 %v1652_v49, %v1651_v48  ;;  %v3114_v53 = vld [vmem:[%s6154_s1 + $0x98] sm:$0xff]  ;;  %v1653_v54 = vld [vmem:[#allocation2 + $0x230] sm:$0xff]  ;;  %v3115_v59 = vld [vmem:[%s6154_s1 + $0xa0] sm:$0xff]  ;;  %s3002_s14 = sshll.u32 %s422_s30, 4  ;;  %s6113_s14 = int_to_ptr.vmem [resolvable:$true] %s3002_s14 }
  0x73   : > { %v5605_v25 = vsel %vm1001_vm1, %v1002_v19, %v1003_v20  ;;  %v5607_v26 = vsel %vm1001_vm1, %v1003_v20, %v1005_v21  ;;  %v1654_v55 = vld [vmem:[#allocation2 + $0x238] sm:$0xff]  ;;  %v4470_v56 = vpack.c.bf16 %v3114_v53, %v3113_v52  ;;  %v3116_v60 = vld [vmem:[%s6154_s1 + $0xa8] sm:$0xff]  ;;  %v1655_v61 = vld [vmem:[#allocation2 + $0x240] sm:$0xff]  ;;  %s5242_s11 = scalar_lea.vmem %s6113_s14, 16  ;;  %p5249_p13 = scmp.lt.s32.totalorder %s6113_s14, %s5247_s23 }
  0x74   : > { %452 = vrot.lane.b32.xlu0 %v5549_v1, %s5319_s26  ;;  %624 = vrot.lane.b32.xlu1 %v5549_v1, %s5320_s17  ;;  %v4684_v58 = vpack.c.bf16 %v1654_v55, %v1653_v54  ;;  %v1656_v62 = vld [vmem:[#allocation2 + $0x248] sm:$0xff]  ;;  %v4474_v63 = vpack.c.bf16 %v3116_v60, %v3115_v59  ;;  %v3117_v2 = vld [vmem:[%s6154_s1 + $0xb0] sm:$0xff]  ;;  %v3118_v3 = vld [vmem:[%s6154_s1 + $0xb8] sm:$0xff]  ;;  %p5243_p12 = scmp.ne.s32.totalorder %s6113_s14, %s5242_s11 }
  0x75   : > { %4445 = vmatpush3.bf16.msra.mxu0 %v4442_v16  ;;  %4679 = vmatpush3.bf16.msra.mxu1 %v4678_v45  ;;  %v1658_v4 = vld [vmem:[#allocation2 + $0x258] sm:$0xff]  ;;  %v4478_v5 = vpack.c.bf16 %v3118_v3, %v3117_v2  ;;  %v3121_v7 = vld [vmem:[%s6154_s1 + $0xc0] sm:$0xff]  ;;  %v3122_v8 = vld [vmem:[%s6154_s1 + $0xc8] sm:$0xff] }
  0x76   : > { %4447 = vmatprep.subr.bf16.mxu0 %v4446_v22  ;;  %4680 = vmatprep.subr.bf16.mxu1 %v5321_v38  ;;  %v4482_v9 = vpack.c.bf16 %v3122_v8, %v3121_v7  ;;  %v3123_v10 = vld [vmem:[%s6154_s1 + $0xd0] sm:$0xff]  ;;  %v3124_v11 = vld [vmem:[%s6154_s1 + $0xd8] sm:$0xff]  ;;  %v3125_v16 = vld [vmem:[%s6154_s1 + $0xe0] sm:$0xff]  ;;  %p5244_p8 = pnand %p5243_p12, %p6193_p7 }
  0x77   : > { %v4486_v13 = vpack.c.bf16 %v3124_v11, %v3123_v10  ;;  %v3126_v17 = vld [vmem:[%s6154_s1 + $0xe8] sm:$0xff]  ;;  %v3127_v19 = vld [vmem:[%s6154_s1 + $0xf0] sm:$0xff]  ;;  %v3128_v20 = vld [vmem:[%s6154_s1 + $0xf8] sm:$0xff] }
  0x78   : > { %813 = vrot.lane.b32.xlu0 %v5579_v14, %s5319_s26  ;;  %815 = vrot.lane.b32.xlu1 %v5581_v15, %s5319_s26  ;;  %v4490_v18 = vpack.c.bf16 %v3126_v17, %v3125_v16  ;;  %v4494_v21 = vpack.c.bf16 %v3128_v20, %v3127_v19  ;;  %v3133_v24 = vld [vmem:[%s6154_s1 + $0x110] sm:$0xff]  ;;  %v3135_v30 = vld [vmem:[%s6154_s1 + $0x120] sm:$0xff]  ;;  %p5245_p11 = pneg %p5244_p8 }
  0x79   : > { %4449 = vmatpush3.bf16.msra.mxu0 %v4446_v22  ;;  %4682 = vmatpush3.bf16.msra.mxu1 %v4681_v51  ;;  %v3131_v22 = vld [vmem:[%s6154_s1 + $0x100] sm:$0xff]  ;;  %v3137_v33 = vld [vmem:[%s6154_s1 + $0x130] sm:$0xff]  ;;  %v3138_v34 = vld [vmem:[%s6154_s1 + $0x138] sm:$0xff] }
  0x7a   : > { %4451 = vmatprep.subr.bf16.mxu0 %v4450_v27  ;;  %4683 = vmatprep.subr.bf16.mxu1 %v5321_v38  ;;  %v4510_v35 = vpack.c.bf16 %v3138_v34, %v3137_v33  ;;  %v3142_v36 = vld [vmem:[%s6154_s1 + $0x148] sm:$0xff]  ;;  %v3143_v39 = vld [vmem:[%s6154_s1 + $0x150] sm:$0xff]  ;;  %v3144_v40 = vld [vmem:[%s6154_s1 + $0x158] sm:$0xff] }
  0x7b   : > { %v4518_v42 = vpack.c.bf16 %v3144_v40, %v3143_v39  ;;  %v3146_v45 = vld [vmem:[%s6154_s1 + $0x168] sm:$0xff]  ;;  %v3147_v47 = vld [vmem:[%s6154_s1 + $0x170] sm:$0xff]  ;;  %v3148_v48 = vld [vmem:[%s6154_s1 + $0x178] sm:$0xff] }
  0x7c   : > { %907 = vrot.lane.b32.xlu0 %v5579_v14, %s5320_s17  ;;  %909 = vrot.lane.b32.xlu1 %v5581_v15, %s5320_s17  ;;  %v4526_v49 = vpack.c.bf16 %v3148_v48, %v3147_v47  ;;  %v3152_v51 = vld [vmem:[%s6154_s1 + $0x188] sm:$0xff]  ;;  %v3153_v53 = vld [vmem:[%s6154_s1 + $0x190] sm:$0xff]  ;;  %v1292_v34 = vld [vmem:[#allocation2 + $0x20] sm:$0xff] }
  0x7d   : > { %4685 = vmatpush3.bf16.msra.mxu1 %v4684_v58  ;;  %v3154_v54 = vld [vmem:[%s6154_s1 + $0x198] sm:$0xff]  ;;  %v3156_v58 = vld [vmem:[%s6154_s1 + $0x1a8] sm:$0xff]  ;;  %v3157_v60 = vld [vmem:[%s6154_s1 + $0x1b0] sm:$0xff] }
  0x7e   : > { %4686 = vmatprep.subr.bf16.mxu1 %v5321_v38  ;;  %v3163_v2 = vld [vmem:[%s6154_s1 + $0x1d0] sm:$0xff]  ;;  %v3164_v3 = vld [vmem:[%s6154_s1 + $0x1d8] sm:$0xff]  ;;  %v3172_v11 = vld [vmem:[%s6154_s1 + $0x208] sm:$0xff] }
  0x7f   : > { %v3167_v8 = vld [vmem:[%s6154_s1 + $0x1f0] sm:$0xff]  ;;  %v3174_v16 = vld [vmem:[%s6154_s1 + $0x218] sm:$0xff]  ;;  %v3175_v20 = vld [vmem:[%s6154_s1 + $0x220] sm:$0xff] }
  0x80   : > { %1097 = vrot.lane.b32.xlu0 %v5605_v25, %s5319_s26  ;;  %1099 = vrot.lane.b32.xlu1 %v5607_v26, %s5319_s26  ;;  %v1296_v40 = vld [vmem:[#allocation2 + $0x40] sm:$0xff]  ;;  %v1301_v47 = vld [vmem:[#allocation2 + $0x68] sm:$0xff]  ;;  %s2990_s26 = scalar_lea.sflag [#allocation4], %s421_s24 }
  0x84   : > { %1191 = vrot.lane.b32.xlu0 %v5605_v25, %s5320_s17  ;;  %1193 = vrot.lane.b32.xlu1 %v5607_v26, %s5320_s17  ;;  %s5248_s17 = scalar_lea.vmem %s5247_s23, 32 }
  0x85   : > { %p5250_p1 = scmp.lt.s32.totalorder %s5248_s17, %s5242_s11 }
  0x87   : > { %p5251_p6 = por %p5250_p1, %p5249_p13 }
  0x89   : > { %p5252_p9 = pnand %p5251_p6, %p5245_p11 }
  0xe2   : > { %v451_v28 = vpop.permute.xlu0 %450  ;;  %v623_v57 = vpop.permute.xlu1 %622 }
  0xe3   : > { %3614 = vmatprep.mubr.msk.f32.mxu0 %vm454_vm2, %v451_v28 }
  0xe6   : > { %v453_v32 = vpop.permute.xlu0 %452  ;;  %v625_v12 = vpop.permute.xlu1 %624 }
  0xe7   : > { %3615 = vmatmul.mubr.msk.f32.vlgmr.msra.gmra.mrb[0].mxu0 %vm454_vm2, %v453_v32 }
  0xe8   : > { %4453 = vmatpush3.bf16.msra.mxu0 %v4450_v27  ;;  %3633 = vmatprep.mubr.msk.f32.mxu0 %vm454_vm2, %v5547_v0  ;;  %v4687_v0 = vpack.c.bf16 %v1656_v62, %v1655_v61  ;;  %v3134_v27 = vld [vmem:[%s6154_s1 + $0x118] sm:$0xff] }
  0xe9   : > { %4455 = vmatprep.subr.bf16.mxu0 %v4454_v31  ;;  %v4502_v28 = vpack.c.bf16 %v3134_v27, %v3133_v24  ;;  %v3158_v61 = vld [vmem:[%s6154_s1 + $0x1b8] sm:$0xff]  ;;  %v1288_v27 = vld [vmem:[#allocation2] sm:$0xff] }
  0xea   : > { %4688 = vmatpush3.bf16.msra.mxu1 %v4687_v0  ;;  %v814_v29 = vpop.permute.xlu0 %813  ;;  %v816_v41 = vpop.permute.xlu1 %815  ;;  %v4542_v62 = vpack.c.bf16 %v3158_v61, %v3157_v60  ;;  %v1376_v61 = vld [vmem:[#allocation2 + $0x80] sm:$0xff] }
  0xeb   : > { %4689 = vmatprep.subr.bf16.mxu1 %v5321_v38 }
  0xec   : > { %4457 = vmatpush3.bf16.msra.mxu0 %v4454_v31  ;;  %v3136_v31 = vld [vmem:[%s6154_s1 + $0x128] sm:$0xff] }
  0xed   : > { %4459 = vmatprep.subr.bf16.mxu0 %v4458_v37  ;;  %v4506_v32 = vpack.c.bf16 %v3136_v31, %v3135_v30  ;;  %v1290_v31 = vld [vmem:[#allocation2 + $0x10] sm:$0xff] }
  0xee   : > { %v908_v43 = vpop.permute.xlu0 %907  ;;  %v910_v55 = vpop.permute.xlu1 %909 }
  0xf0   : > { %4461 = vmatpush3.bf16.msra.mxu0 %v4458_v37 }
  0xf1   : > { %4463 = vmatprep.subr.bf16.mxu0 %v4462_v44 }
  0xf2   : > { %v1100_v17 = vpop.permute.xlu1 %1099 }
  0xf4   : > { %4465 = vmatpush3.bf16.msra.mxu0 %v4462_v44  ;;  %v3145_v44 = vld [vmem:[%s6154_s1 + $0x160] sm:$0xff] }
  0xf5   : > { %4467 = vmatprep.subr.bf16.mxu0 %v4466_v50  ;;  %v4522_v46 = vpack.c.bf16 %v3146_v45, %v3145_v44  ;;  %v1299_v44 = vld [vmem:[#allocation2 + $0x58] sm:$0xff] }
  0xf7   : > { %3634 = vmatmul.mubr.msk.f32.vlgmr.msra.gmra.mrb[0].mxu0 %vm454_vm2, %v5549_v1  ;;  %v1657_v1 = vld [vmem:[#allocation2 + $0x250] sm:$0xff] }
  0xf8   : > { %4469 = vmatpush3.bf16.msra.mxu0 %v4466_v50  ;;  %3652 = vmatprep.mubr.msk.f32.mxu0 %vm454_vm2, %v623_v57  ;;  %v4690_v6 = vpack.c.bf16 %v1658_v4, %v1657_v1  ;;  %v3151_v50 = vld [vmem:[%s6154_s1 + $0x180] sm:$0xff]  ;;  %v4550_v1 = vpack.c.bf16 %v3164_v3, %v3163_v2  ;;  %v1098_v4 = vpop.permute.xlu0 %1097  ;;  %v1738_v3 = vld [vmem:[#allocation2 + $0x288] sm:$0xff] }
  0xf9   : > { %4471 = vmatprep.subr.bf16.mxu0 %v4470_v56  ;;  %v4530_v52 = vpack.c.bf16 %v3152_v51, %v3151_v50  ;;  %v3155_v57 = vld [vmem:[%s6154_s1 + $0x1a0] sm:$0xff]  ;;  %v1660_v50 = vld [vmem:[#allocation2 + $0x268] sm:$0xff] }
  0xfa   : > { %4691 = vmatpush3.bf16.msra.mxu1 %v4690_v6  ;;  %v4538_v59 = vpack.c.bf16 %v3156_v58, %v3155_v57  ;;  %v3166_v6 = vld [vmem:[%s6154_s1 + $0x1e8] sm:$0xff]  ;;  %v5323_v58 = vmov 0.0   ;;  %v1737_v2 = vld [vmem:[#allocation2 + $0x280] sm:$0xff] }
  0xfb   : > { %4692 = vmatprep.subr.bf16.mxu1 %v5321_v38  ;;  %3941 = vmatprep.mubr.msk.f32.mxu1 %vm5322_vm3, %v5323_v58 }
  0xfc   : > { %4473 = vmatpush3.bf16.msra.mxu0 %v4470_v56  ;;  %v4534_v56 = vpack.c.bf16 %v3154_v54, %v3153_v53  ;;  %v1192_v19 = vpop.permute.xlu0 %1191  ;;  %v1303_v53 = vld [vmem:[#allocation2 + $0x78] sm:$0xff] }
  0xfd   : > { %4475 = vmatprep.subr.bf16.mxu0 %v4474_v63 }
 0x100   : > { %4477 = vmatpush3.bf16.msra.mxu0 %v4474_v63  ;;  %v3161_v63 = vld [vmem:[%s6154_s1 + $0x1c0] sm:$0xff] }
 0x101   : > { %4479 = vmatprep.subr.bf16.mxu0 %v4478_v5 }
 0x104   : > { %4481 = vmatpush3.bf16.msra.mxu0 %v4478_v5  ;;  %v3165_v5 = vld [vmem:[%s6154_s1 + $0x1e0] sm:$0xff] }
 0x105   : > { %4483 = vmatprep.subr.bf16.mxu0 %v4482_v9  ;;  %v4554_v7 = vpack.c.bf16 %v3166_v6, %v3165_v5  ;;  %v1378_v5 = vld [vmem:[#allocation2 + $0x90] sm:$0xff]  ;;  %v1379_v6 = vld [vmem:[#allocation2 + $0x98] sm:$0xff] }
 0x107   : > { %3653 = vmatmul.mubr.msk.f32.vlgmr.msra.gmra.mrb[0].mxu0 %vm454_vm2, %v625_v12 }
 0x108   : > { %4485 = vmatpush3.bf16.msra.mxu0 %v4482_v9  ;;  %3671 = vmatprep.mubr.msk.f32.mxu0 %vm454_vm2, %v5579_v14  ;;  %v3132_v14 = vld [vmem:[%s6154_s1 + $0x108] sm:$0xff]  ;;  %v3168_v9 = vld [vmem:[%s6154_s1 + $0x1f8] sm:$0xff] }
 0x109   : > { %4487 = vmatprep.subr.bf16.mxu0 %v4486_v13  ;;  %v4498_v23 = vpack.c.bf16 %v3132_v14, %v3131_v22  ;;  %v4558_v10 = vpack.c.bf16 %v3168_v9, %v3167_v8  ;;  %v3177_v14 = vld [vmem:[%s6154_s1 + $0x230] sm:$0xff] }
 0x10a   : > { %v1739_v9 = vld [vmem:[#allocation2 + $0x290] sm:$0xff] }
 0x10c   : > { %4489 = vmatpush3.bf16.msra.mxu0 %v4486_v13  ;;  %v3173_v13 = vld [vmem:[%s6154_s1 + $0x210] sm:$0xff] }
 0x10d   : > { %4491 = vmatprep.subr.bf16.mxu0 %v4490_v18 }
 0x110   : > { %4493 = vmatpush3.bf16.msra.mxu0 %v4490_v18  ;;  %v4566_v18 = vpack.c.bf16 %v3174_v16, %v3173_v13  ;;  %v1741_v16 = vld [vmem:[#allocation2 + $0x2a0] sm:$0xff] }
 0x111   : > { %4495 = vmatprep.subr.bf16.mxu0 %v4494_v21 }
 0x114   : > { %4497 = vmatpush3.bf16.msra.mxu0 %v4494_v21  ;;  %v3176_v21 = vld [vmem:[%s6154_s1 + $0x228] sm:$0xff] }
 0x115   : > { %4499 = vmatprep.subr.bf16.mxu0 %v4498_v23  ;;  %v4570_v22 = vpack.c.bf16 %v3176_v21, %v3175_v20  ;;  %v1383_v20 = vld [vmem:[#allocation2 + $0xb8] sm:$0xff] }
 0x117   : > { %3672 = vmatmul.mubr.msk.f32.vlgmr.msra.gmra.mrb[0].mxu0 %vm454_vm2, %v5581_v15  ;;  %v3141_v15 = vld [vmem:[%s6154_s1 + $0x140] sm:$0xff] }
 0x118   : > { %4501 = vmatpush3.bf16.msra.mxu0 %v4498_v23  ;;  %3690 = vmatprep.mubr.msk.f32.mxu0 %vm454_vm2, %v814_v29  ;;  %v4514_v37 = vpack.c.bf16 %v3142_v36, %v3141_v15  ;;  %v3178_v23 = vld [vmem:[%s6154_s1 + $0x238] sm:$0xff]  ;;  %v1194_v29 = vpop.permute.xlu1 %1193  ;;  %v1294_v36 = vld [vmem:[#allocation2 + $0x30] sm:$0xff] }
 0x119   : > { %4503 = vmatprep.subr.bf16.mxu0 %v4502_v28  ;;  %v4574_v24 = vpack.c.bf16 %v3178_v23, %v3177_v14  ;;  %v1744_v14 = vld [vmem:[#allocation2 + $0x2b8] sm:$0xff] }
 0x11c   : > { %4505 = vmatpush3.bf16.msra.mxu0 %v4502_v28  ;;  %v1289_v28 = vld [vmem:[#allocation2 + $0x8] sm:$0xff] }
 0x11d   : > { %4507 = vmatprep.subr.bf16.mxu0 %v4506_v32  ;;  %v4579_v30 = vpack.c.bf16 %v1289_v28, %v1288_v27  ;;  %v1385_v27 = vld [vmem:[#allocation2 + $0xc8] sm:$0xff] }
 0x120   : > { %4509 = vmatpush3.bf16.msra.mxu0 %v4506_v32  ;;  %v1291_v32 = vld [vmem:[#allocation2 + $0x18] sm:$0xff] }
 0x121   : > { %4511 = vmatprep.subr.bf16.mxu0 %v4510_v35  ;;  %v4582_v33 = vpack.c.bf16 %v1291_v32, %v1290_v31  ;;  %v1386_v32 = vld [vmem:[#allocation2 + $0xd0] sm:$0xff] }
 0x124   : > { %4513 = vmatpush3.bf16.msra.mxu0 %v4510_v35  ;;  %v1293_v35 = vld [vmem:[#allocation2 + $0x28] sm:$0xff] }
 0x125   : > { %4515 = vmatprep.subr.bf16.mxu0 %v4514_v37  ;;  %v4585_v15 = vpack.c.bf16 %v1293_v35, %v1292_v34  ;;  %v1747_v35 = vld [vmem:[#allocation2 + $0x2d0] sm:$0xff] }
 0x127   : > { %3691 = vmatmul.mubr.msk.f32.vlgmr.msra.gmra.mrb[0].mxu0 %vm454_vm2, %v816_v41  ;;  %v1297_v41 = vld [vmem:[#allocation2 + $0x48] sm:$0xff] }
 0x128   : > { %4517 = vmatpush3.bf16.msra.mxu0 %v4514_v37  ;;  %3709 = vmatprep.mubr.msk.f32.mxu0 %vm454_vm2, %v908_v43  ;;  %v1295_v37 = vld [vmem:[#allocation2 + $0x38] sm:$0xff]  ;;  %v1298_v43 = vld [vmem:[#allocation2 + $0x50] sm:$0xff] }
 0x129   : > { %4519 = vmatprep.subr.bf16.mxu0 %v4518_v42  ;;  %v4588_v39 = vpack.c.bf16 %v1295_v37, %v1294_v36  ;;  %v4594_v45 = vpack.c.bf16 %v1299_v44, %v1298_v43  ;;  %v1388_v37 = vld [vmem:[#allocation2 + $0xe0] sm:$0xff]  ;;  %v1390_v44 = vld [vmem:[#allocation2 + $0xf0] sm:$0xff] }
 0x12c   : > { %4521 = vmatpush3.bf16.msra.mxu0 %v4518_v42  ;;  %v4591_v42 = vpack.c.bf16 %v1297_v41, %v1296_v40  ;;  %v1749_v41 = vld [vmem:[#allocation2 + $0x2e0] sm:$0xff] }
 0x12d   : > { %4523 = vmatprep.subr.bf16.mxu0 %v4522_v46 }
 0x130   : > { %4525 = vmatpush3.bf16.msra.mxu0 %v4522_v46  ;;  %v1300_v46 = vld [vmem:[#allocation2 + $0x60] sm:$0xff] }
 0x131   : > { %4527 = vmatprep.subr.bf16.mxu0 %v4526_v49  ;;  %v4597_v48 = vpack.c.bf16 %v1301_v47, %v1300_v46  ;;  %v1751_v47 = vld [vmem:[#allocation2 + $0x2f0] sm:$0xff] }
 0x134   : > { %4529 = vmatpush3.bf16.msra.mxu0 %v4526_v49  ;;  %v1659_v49 = vld [vmem:[#allocation2 + $0x260] sm:$0xff] }
 0x135   : > { %4531 = vmatprep.subr.bf16.mxu0 %v4530_v52  ;;  %v4693_v51 = vpack.c.bf16 %v1660_v50, %v1659_v49  ;;  %v1467_v50 = vld [vmem:[#allocation2 + $0x100] sm:$0xff] }
 0x137   : > { %3710 = vmatmul.mubr.msk.f32.vlgmr.msra.gmra.mrb[0].mxu0 %vm454_vm2, %v910_v55  ;;  %4694 = vmatpush3.bf16.msra.mxu1 %v4693_v51  ;;  %v1661_v55 = vld [vmem:[#allocation2 + $0x270] sm:$0xff]  ;;  %v1468_v51 = vld [vmem:[#allocation2 + $0x108] sm:$0xff] }
 0x138   : > { %4533 = vmatpush3.bf16.msra.mxu0 %v4530_v52  ;;  %3728 = vmatprep.mubr.msk.f32.mxu0 %vm454_vm2, %v5605_v25  ;;  %v3162_v25 = vld [vmem:[%s6154_s1 + $0x1c8] sm:$0xff]  ;;  %v1302_v52 = vld [vmem:[#allocation2 + $0x70] sm:$0xff] }
 0x139   : > { %4535 = vmatprep.subr.bf16.mxu0 %v4534_v56  ;;  %v4546_v0 = vpack.c.bf16 %v3162_v25, %v3161_v63  ;;  %v4600_v54 = vpack.c.bf16 %v1303_v53, %v1302_v52  ;;  %4695 = vmatprep.subr.bf16.mxu1 %v5321_v38  ;;  %v1827_v53 = vld [vmem:[#allocation2 + $0x300] sm:$0xff] }
 0x13c   : > { %4537 = vmatpush3.bf16.msra.mxu0 %v4534_v56  ;;  %v1662_v56 = vld [vmem:[#allocation2 + $0x278] sm:$0xff] }
 0x13d   : > { %4539 = vmatprep.subr.bf16.mxu0 %v4538_v59  ;;  %v4696_v57 = vpack.c.bf16 %v1662_v56, %v1661_v55  ;;  %v4627_v55 = vpack.c.bf16 %v1468_v51, %v1467_v50  ;;  %v1919_v51 = vld [vmem:[#allocation2 + $0x390] sm:$0xff] }
 0x13f   : > { %4697 = vmatpush3.bf16.msra.mxu1 %v4696_v57  ;;  %v1469_v57 = vld [vmem:[#allocation2 + $0x110] sm:$0xff] }
 0x140   : > { %4541 = vmatpush3.bf16.msra.mxu0 %v4538_v59  ;;  %4698 = vmatprep.subr.bf16.mxu1 %v5321_v38  ;;  %v3181_v59 = vld [vmem:[%s6155_s2] ss:$0 sm:$0xff] }
 0x141   : > { %4543 = vmatprep.subr.bf16.mxu0 %v4542_v62 }
 0x144   : > { %4545 = vmatpush3.bf16.msra.mxu0 %v4542_v62  ;;  %v1377_v62 = vld [vmem:[#allocation2 + $0x88] sm:$0xff] }
 0x145   : > { %4547 = vmatprep.subr.bf16.mxu0 %v4546_v0 }
 0x147   : > { %3729 = vmatmul.mubr.msk.f32.vlgmr.msra.gmra.mrb[0].mxu0 %vm454_vm2, %v5607_v26  ;;  %v3171_v26 = vld [vmem:[%s6154_s1 + $0x200] sm:$0xff] }
 0x148   : > { %4549 = vmatpush3.bf16.msra.mxu0 %v4546_v0  ;;  %3747 = vmatprep.mubr.msk.f32.mxu0 %vm454_vm2, %v1098_v4  ;;  %v4562_v12 = vpack.c.bf16 %v3172_v11, %v3171_v26  ;;  %v4606_v26 = vpack.c.bf16 %v1379_v6, %v1378_v5  ;;  %v1380_v11 = vld [vmem:[#allocation2 + $0xa0] sm:$0xff]  ;;  %v1832_v6 = vld [vmem:[#allocation2 + $0x328] sm:$0xff] }
 0x149   : > { %4551 = vmatprep.subr.bf16.mxu0 %v4550_v1  ;;  %v1831_v5 = vld [vmem:[#allocation2 + $0x320] sm:$0xff] }
 0x14c   : > { %4553 = vmatpush3.bf16.msra.mxu0 %v4550_v1  ;;  %v4603_v1 = vpack.c.bf16 %v1377_v62, %v1376_v61  ;;  %v1829_v62 = vld [vmem:[#allocation2 + $0x310] sm:$0xff] }
 0x14d   : > { %4555 = vmatprep.subr.bf16.mxu0 %v4554_v7 }
 0x150   : > { %4557 = vmatpush3.bf16.msra.mxu0 %v4554_v7  ;;  %v4699_v7 = vpack.c.bf16 %v1738_v3, %v1737_v2  ;;  %v1471_v2 = vld [vmem:[#allocation2 + $0x120] sm:$0xff]  ;;  %v1472_v3 = vld [vmem:[#allocation2 + $0x128] sm:$0xff] }
 0x151   : > { %4559 = vmatprep.subr.bf16.mxu0 %v4558_v10 }
 0x154   : > { %4561 = vmatpush3.bf16.msra.mxu0 %v4558_v10  ;;  %v1740_v10 = vld [vmem:[#allocation2 + $0x298] sm:$0xff] }
 0x155   : > { %4563 = vmatprep.subr.bf16.mxu0 %v4562_v12  ;;  %v4702_v13 = vpack.c.bf16 %v1740_v10, %v1739_v9  ;;  %v1474_v9 = vld [vmem:[#allocation2 + $0x138] sm:$0xff]  ;;  %v4729_v10 = vpack.c.bf16 %v1832_v6, %v1831_v5  ;;  %v1566_v5 = vld [vmem:[#allocation2 + $0x1c8] sm:$0xff] }
 0x157   : > { %3748 = vmatmul.mubr.msk.f32.vlgmr.msra.gmra.mrb[0].mxu0 %vm454_vm2, %v1100_v17  ;;  %v1742_v17 = vld [vmem:[#allocation2 + $0x2a8] sm:$0xff] }
 0x158   : > { %4565 = vmatpush3.bf16.msra.mxu0 %v4562_v12  ;;  %3766 = vmatprep.mubr.msk.f32.mxu0 %vm454_vm2, %v1192_v19  ;;  %v1381_v12 = vld [vmem:[#allocation2 + $0xa8] sm:$0xff]  ;;  %v1382_v19 = vld [vmem:[#allocation2 + $0xb0] sm:$0xff]  ;;  %v4705_v21 = vpack.c.bf16 %v1742_v17, %v1741_v16 }
 0x159   : > { %4567 = vmatprep.subr.bf16.mxu0 %v4566_v18  ;;  %v4612_v23 = vpack.c.bf16 %v1383_v20, %v1382_v19  ;;  %v1476_v16 = vld [vmem:[#allocation2 + $0x148] sm:$0xff] }
 0x15a   : > { %v1836_v19 = vld [vmem:[#allocation2 + $0x348] sm:$0xff] }
 0x15c   : > { %4569 = vmatpush3.bf16.msra.mxu0 %v4566_v18  ;;  %v4609_v18 = vpack.c.bf16 %v1381_v12, %v1380_v11  ;;  %v1834_v11 = vld [vmem:[#allocation2 + $0x338] sm:$0xff] }
 0x15d   : > { %4571 = vmatprep.subr.bf16.mxu0 %v4570_v22 }
 0x160   : > { %4573 = vmatpush3.bf16.msra.mxu0 %v4570_v22  ;;  %v1743_v22 = vld [vmem:[#allocation2 + $0x2b0] sm:$0xff] }
 0x161   : > { %4575 = vmatprep.subr.bf16.mxu0 %v4574_v24  ;;  %v4708_v28 = vpack.c.bf16 %v1744_v14, %v1743_v22  ;;  %v1478_v22 = vld [vmem:[#allocation2 + $0x158] sm:$0xff] }
 0x164   : > { %4577 = vmatpush3.bf16.msra.mxu0 %v4574_v24  ;;  %v1384_v24 = vld [vmem:[#allocation2 + $0xc0] sm:$0xff] }
 0x165   : > { %4578 = vmatprep.subr.bf16.mxu0 %v5321_v38  ;;  %v4615_v31 = vpack.c.bf16 %v1385_v27, %v1384_v24  ;;  %v1838_v24 = vld [vmem:[#allocation2 + $0x358] sm:$0xff] }
 0x167   : > { %3767 = vmatmul.mubr.msk.f32.vlgmr.msra.gmra.mrb[0].mxu0 %vm454_vm2, %v1194_v29  ;;  %v1745_v29 = vld [vmem:[#allocation2 + $0x2c0] sm:$0xff] }
 0x168   : > { %4580 = vmatpush3.bf16.msra.mxu0 %v4579_v30  ;;  %3801 = vmatprep.mubr.msk.f32.mxu0 %vm5322_vm3, %v5323_v58  ;;  %v1746_v30 = vld [vmem:[#allocation2 + $0x2c8] sm:$0xff] }
 0x169   : > { %4581 = vmatprep.subr.bf16.mxu0 %v5321_v38  ;;  %v4711_v34 = vpack.c.bf16 %v1746_v30, %v1745_v29  ;;  %v1480_v29 = vld [vmem:[#allocation2 + $0x168] sm:$0xff] }
 0x16c   : > { %4583 = vmatpush3.bf16.msra.mxu0 %v4582_v33  ;;  %v1387_v33 = vld [vmem:[#allocation2 + $0xd8] sm:$0xff] }
 0x16d   : > { %4584 = vmatprep.subr.bf16.mxu0 %v5321_v38  ;;  %v4618_v36 = vpack.c.bf16 %v1387_v33, %v1386_v32  ;;  %v1840_v32 = vld [vmem:[#allocation2 + $0x368] sm:$0xff] }
 0x170   : > { %4586 = vmatpush3.bf16.msra.mxu0 %v4585_v15  ;;  %v1748_v15 = vld [vmem:[#allocation2 + $0x2d8] sm:$0xff] }
 0x171   : > { %4587 = vmatprep.subr.bf16.mxu0 %v5321_v38  ;;  %v4714_v40 = vpack.c.bf16 %v1748_v15, %v1747_v35  ;;  %v1482_v35 = vld [vmem:[#allocation2 + $0x178] sm:$0xff] }
 0x174   : > { %4589 = vmatpush3.bf16.msra.mxu0 %v4588_v39  ;;  %v1389_v39 = vld [vmem:[#allocation2 + $0xe8] sm:$0xff] }
 0x175   : > { %4590 = vmatprep.subr.bf16.mxu0 %v5321_v38  ;;  %v4621_v43 = vpack.c.bf16 %v1389_v39, %v1388_v37  ;;  %v1842_v37 = vld [vmem:[#allocation2 + $0x378] sm:$0xff] }
 0x178   : > { %4592 = vmatpush3.bf16.msra.mxu0 %v4591_v42  ;;  %v1750_v42 = vld [vmem:[#allocation2 + $0x2e8] sm:$0xff] }
 0x179   : > { %4593 = vmatprep.subr.bf16.mxu0 %v5321_v38  ;;  %v4717_v46 = vpack.c.bf16 %v1750_v42, %v1749_v41  ;;  %v1558_v41 = vld [vmem:[#allocation2 + $0x188] sm:$0xff] }
 0x17c   : > { %4595 = vmatpush3.bf16.msra.mxu0 %v4594_v45  ;;  %v1391_v45 = vld [vmem:[#allocation2 + $0xf8] sm:$0xff] }
 0x17d   : > { %4596 = vmatprep.subr.bf16.mxu0 %v5321_v38  ;;  %v4624_v49 = vpack.c.bf16 %v1391_v45, %v1390_v44  ;;  %v1918_v44 = vld [vmem:[#allocation2 + $0x388] sm:$0xff] }
 0x180   : > { %4598 = vmatpush3.bf16.msra.mxu0 %v4597_v48  ;;  %v1752_v48 = vld [vmem:[#allocation2 + $0x2f8] sm:$0xff] }
 0x181   : > { %4599 = vmatprep.subr.bf16.mxu0 %v5321_v38  ;;  %v4720_v52 = vpack.c.bf16 %v1752_v48, %v1751_v47  ;;  %v1559_v47 = vld [vmem:[#allocation2 + $0x190] sm:$0xff]  ;;  %v1560_v48 = vld [vmem:[#allocation2 + $0x198] sm:$0xff] }
 0x184   : > { %4601 = vmatpush3.bf16.msra.mxu0 %v4600_v54  ;;  %v1828_v54 = vld [vmem:[#allocation2 + $0x308] sm:$0xff] }
 0x185   : > { %4602 = vmatprep.subr.bf16.mxu0 %v5321_v38 }
 0x23a   : > { %v3768_v60 = vpop.f32.mrb[0].mxu0 }
 0x23b   : > { %v5852_v63 = vadd.f32 %v3768_v60, %v3181_v59  ;;  %v1265_v25 = vpop.f32.mrb[1].mxu0  ;;  %v4723_v60 = vpack.c.bf16 %v1828_v54, %v1827_v53  ;;  %v4654_v53 = vpack.c.bf16 %v1560_v48, %v1559_v47  ;;  %v1561_v54 = vld [vmem:[#allocation2 + $0x1a0] sm:$0xff]  ;;  %v2017_v47 = vld [vmem:[#allocation2 + $0x450] sm:$0xff]  ;;  %v2018_v48 = vld [vmem:[#allocation2 + $0x458] sm:$0xff] }
 0x23c   : > { %v1283_v0 = vadd.f32 %v3181_v59, %v1265_v25  ;;  %v1470_v59 = vld [vmem:[#allocation2 + $0x118] sm:$0xff] }
 0x23d   : > { %v1830_v25 = vld [vmem:[#allocation2 + $0x318] sm:$0xff] }
 0x23e   : > { %v5854_v4 = vmax.f32 %v1283_v0, 0.0  ;;  %v4630_v0 = vpack.c.bf16 %v1470_v59, %v1469_v57  ;;  %v1921_v57 = vld [vmem:[#allocation2 + $0x3a0] sm:$0xff]  ;;  %v1922_v59 = vld [vmem:[#allocation2 + $0x3a8] sm:$0xff] }
 0x240   : > { %3802 = vmatmul.mubr.f32.vlgmr.msra.gmra.mrb[2].mxu0 %v5854_v4  ;;  %v1663_v8 = vrot.slane %v5854_v4, 4  ;;  %v1393_v56 = vrot.slane %v5854_v4, 1  ;;  %v1753_v61 = vrot.slane %v5854_v4, 5  ;;  %v1843_v50 = vrot.slane %v5854_v4, 6 }
 0x241   : > { %4604 = vmatpush3.bf16.msra.mxu0 %v4603_v1  ;;  %3836 = vmatprep.mubr.msk.f32.mxu0 %vm5322_vm3, %v5323_v58  ;;  %v4726_v1 = vpack.c.bf16 %v1830_v25, %v1829_v62  ;;  %v1564_v62 = vld [vmem:[#allocation2 + $0x1b8] sm:$0xff]  ;;  %v4753_v25 = vpack.c.bf16 %v1922_v59, %v1921_v57  ;;  %v2096_v57 = vld [vmem:[#allocation2 + $0x488] sm:$0xff] }
 0x242   : > { %3942 = vmatmul.mubr.f32.vlgmr.msra.gmra.mrb[0].mxu1 %v1663_v8  ;;  %4605 = vmatprep.subr.bf16.mxu0 %v5321_v38  ;;  %v1473_v8 = vld [vmem:[#allocation2 + $0x130] sm:$0xff] }
 0x243   : > { %4700 = vmatpush3.bf16.msra.mxu1 %v4699_v7  ;;  %3976 = vmatprep.mubr.msk.f32.mxu1 %vm5322_vm3, %v5323_v58  ;;  %v4633_v7 = vpack.c.bf16 %v1472_v3, %v1471_v2  ;;  %v4636_v12 = vpack.c.bf16 %v1474_v9, %v1473_v8  ;;  %v1924_v2 = vld [vmem:[#allocation2 + $0x3b8] sm:$0xff]  ;;  %v1926_v8 = vld [vmem:[#allocation2 + $0x3c8] sm:$0xff] }
 0x244   : > { %4701 = vmatprep.subr.bf16.mxu1 %v5321_v38 }
 0x245   : > { %4607 = vmatpush3.bf16.msra.mxu0 %v4606_v26  ;;  %v1833_v26 = vld [vmem:[#allocation2 + $0x330] sm:$0xff] }
 0x246   : > { %4608 = vmatprep.subr.bf16.mxu0 %v5321_v38  ;;  %v4732_v17 = vpack.c.bf16 %v1834_v11, %v1833_v26  ;;  %v1568_v26 = vld [vmem:[#allocation2 + $0x1d8] sm:$0xff] }
 0x247   : > { %4703 = vmatpush3.bf16.msra.mxu1 %v4702_v13  ;;  %v1475_v13 = vld [vmem:[#allocation2 + $0x140] sm:$0xff] }
 0x248   : > { %4704 = vmatprep.subr.bf16.mxu1 %v5321_v38  ;;  %v4639_v20 = vpack.c.bf16 %v1476_v16, %v1475_v13  ;;  %v1928_v13 = vld [vmem:[#allocation2 + $0x3d8] sm:$0xff] }
 0x249   : > { %4610 = vmatpush3.bf16.msra.mxu0 %v4609_v18  ;;  %v1835_v18 = vld [vmem:[#allocation2 + $0x340] sm:$0xff] }
 0x24a   : > { %4611 = vmatprep.subr.bf16.mxu0 %v5321_v38  ;;  %v4735_v14 = vpack.c.bf16 %v1836_v19, %v1835_v18  ;;  %v1570_v18 = vld [vmem:[#allocation2 + $0x1e8] sm:$0xff] }
 0x24b   : > { %4706 = vmatpush3.bf16.msra.mxu1 %v4705_v21  ;;  %v1477_v21 = vld [vmem:[#allocation2 + $0x150] sm:$0xff] }
 0x24c   : > { %4707 = vmatprep.subr.bf16.mxu1 %v5321_v38  ;;  %v4642_v27 = vpack.c.bf16 %v1478_v22, %v1477_v21  ;;  %v1930_v21 = vld [vmem:[#allocation2 + $0x3e8] sm:$0xff] }
 0x24d   : > { %4613 = vmatpush3.bf16.msra.mxu0 %v4612_v23  ;;  %v1837_v23 = vld [vmem:[#allocation2 + $0x350] sm:$0xff] }
 0x24e   : > { %4614 = vmatprep.subr.bf16.mxu0 %v5321_v38  ;;  %v4738_v30 = vpack.c.bf16 %v1838_v24, %v1837_v23  ;;  %v1572_v23 = vld [vmem:[#allocation2 + $0x1f8] sm:$0xff] }
 0x24f   : > { %4709 = vmatpush3.bf16.msra.mxu1 %v4708_v28  ;;  %v1479_v28 = vld [vmem:[#allocation2 + $0x160] sm:$0xff] }
 0x250   : > { %4710 = vmatprep.subr.bf16.mxu1 %v5321_v38  ;;  %v4645_v33 = vpack.c.bf16 %v1480_v29, %v1479_v28  ;;  %v1932_v28 = vld [vmem:[#allocation2 + $0x3f8] sm:$0xff] }
 0x251   : > { %4616 = vmatpush3.bf16.msra.mxu0 %v4615_v31  ;;  %v1839_v31 = vld [vmem:[#allocation2 + $0x360] sm:$0xff] }
 0x252   : > { %4617 = vmatprep.subr.bf16.mxu0 %v5321_v38  ;;  %v4741_v15 = vpack.c.bf16 %v1840_v32, %v1839_v31  ;;  %v2007_v31 = vld [vmem:[#allocation2 + $0x400] sm:$0xff]  ;;  %v2008_v32 = vld [vmem:[#allocation2 + $0x408] sm:$0xff] }
 0x253   : > { %4712 = vmatpush3.bf16.msra.mxu1 %v4711_v34  ;;  %v1481_v34 = vld [vmem:[#allocation2 + $0x170] sm:$0xff] }
 0x254   : > { %4713 = vmatprep.subr.bf16.mxu1 %v5321_v38  ;;  %v4648_v39 = vpack.c.bf16 %v1482_v35, %v1481_v34  ;;  %v4771_v34 = vpack.c.bf16 %v2008_v32, %v2007_v31  ;;  %v1933_v35 = vrot.slane %v5854_v4, 7  ;;  %v2193_v31 = vld [vmem:[#allocation2 + $0x538] sm:$0xff] }
 0x255   : > { %4619 = vmatpush3.bf16.msra.mxu0 %v4618_v36  ;;  %v1841_v36 = vld [vmem:[#allocation2 + $0x370] sm:$0xff] }
 0x256   : > { %4620 = vmatprep.subr.bf16.mxu0 %v5321_v38  ;;  %v4744_v42 = vpack.c.bf16 %v1842_v37, %v1841_v36  ;;  %v2010_v36 = vld [vmem:[#allocation2 + $0x418] sm:$0xff] }
 0x257   : > { %4715 = vmatpush3.bf16.msra.mxu1 %v4714_v40  ;;  %v1557_v40 = vld [vmem:[#allocation2 + $0x180] sm:$0xff] }
 0x258   : > { %4716 = vmatprep.subr.bf16.mxu1 %v5321_v38  ;;  %v4651_v45 = vpack.c.bf16 %v1558_v41, %v1557_v40  ;;  %v2012_v40 = vld [vmem:[#allocation2 + $0x428] sm:$0xff] }
 0x259   : > { %4622 = vmatpush3.bf16.msra.mxu0 %v4621_v43  ;;  %v1917_v43 = vld [vmem:[#allocation2 + $0x380] sm:$0xff] }
 0x25a   : > { %4623 = vmatprep.subr.bf16.mxu0 %v5321_v38 }
 0x25b   : > { %4718 = vmatpush3.bf16.msra.mxu1 %v4717_v46  ;;  %v1483_v46 = vrot.slane %v5854_v4, 2 }
 0x25c   : > { %4719 = vmatprep.subr.bf16.mxu1 %v5321_v38 }
 0x25d   : > { %4625 = vmatpush3.bf16.msra.mxu0 %v4624_v49  ;;  %v4747_v49 = vpack.c.bf16 %v1918_v44, %v1917_v43  ;;  %v2015_v44 = vld [vmem:[#allocation2 + $0x440] sm:$0xff] }
 0x25e   : > { %4626 = vmatprep.subr.bf16.mxu0 %v5321_v38 }
 0x25f   : > { %4721 = vmatpush3.bf16.msra.mxu1 %v4720_v52  ;;  %v1920_v52 = vld [vmem:[#allocation2 + $0x398] sm:$0xff] }
 0x260   : > { %3837 = vmatmul.mubr.f32.vlgmr.msra.gmra.mrb[2].mxu0 %v1393_v56  ;;  %4722 = vmatprep.subr.bf16.mxu1 %v5321_v38  ;;  %v4750_v56 = vpack.c.bf16 %v1920_v52, %v1919_v51  ;;  %v2020_v51 = vld [vmem:[#allocation2 + $0x468] sm:$0xff] }
 0x261   : > { %4628 = vmatpush3.bf16.msra.mxu0 %v4627_v55  ;;  %3871 = vmatprep.mubr.msk.f32.mxu0 %vm5322_vm3, %v5323_v58  ;;  %v1562_v55 = vld [vmem:[#allocation2 + $0x1a8] sm:$0xff] }
 0x262   : > { %3977 = vmatmul.mubr.f32.vlgmr.msra.gmra.mrb[0].mxu1 %v1753_v61  ;;  %4629 = vmatprep.subr.bf16.mxu0 %v5321_v38  ;;  %v1563_v61 = vld [vmem:[#allocation2 + $0x1b0] sm:$0xff] }
 0x263   : > { %4724 = vmatpush3.bf16.msra.mxu1 %v4723_v60  ;;  %4011 = vmatprep.mubr.msk.f32.mxu1 %vm5322_vm3, %v5323_v58  ;;  %v4657_v60 = vpack.c.bf16 %v1562_v55, %v1561_v54  ;;  %v4660_v3 = vpack.c.bf16 %v1564_v62, %v1563_v61  ;;  %v2022_v54 = vld [vmem:[#allocation2 + $0x478] sm:$0xff]  ;;  %v2097_v61 = vld [vmem:[#allocation2 + $0x490] sm:$0xff] }
 0x264   : > { %4725 = vmatprep.subr.bf16.mxu1 %v5321_v38  ;;  %v2098_v62 = vld [vmem:[#allocation2 + $0x498] sm:$0xff] }
 0x265   : > { %4631 = vmatpush3.bf16.msra.mxu0 %v4630_v0  ;;  %v1923_v0 = vld [vmem:[#allocation2 + $0x3b0] sm:$0xff] }
 0x266   : > { %4632 = vmatprep.subr.bf16.mxu0 %v5321_v38  ;;  %v4756_v6 = vpack.c.bf16 %v1924_v2, %v1923_v0  ;;  %v2099_v0 = vld [vmem:[#allocation2 + $0x4a0] sm:$0xff]  ;;  %v2100_v2 = vld [vmem:[#allocation2 + $0x4a8] sm:$0xff] }
 0x267   : > { %4727 = vmatpush3.bf16.msra.mxu1 %v4726_v1  ;;  %v1565_v1 = vld [vmem:[#allocation2 + $0x1c0] sm:$0xff] }
 0x268   : > { %4728 = vmatprep.subr.bf16.mxu1 %v5321_v38  ;;  %v4663_v9 = vpack.c.bf16 %v1566_v5, %v1565_v1  ;;  %v2102_v1 = vld [vmem:[#allocation2 + $0x4b8] sm:$0xff] }
 0x269   : > { %4634 = vmatpush3.bf16.msra.mxu0 %v4633_v7  ;;  %v1925_v7 = vld [vmem:[#allocation2 + $0x3c0] sm:$0xff] }
 0x26a   : > { %4635 = vmatprep.subr.bf16.mxu0 %v5321_v38  ;;  %v4759_v11 = vpack.c.bf16 %v1926_v8, %v1925_v7  ;;  %v2104_v7 = vld [vmem:[#allocation2 + $0x4c8] sm:$0xff] }
 0x26b   : > { %4730 = vmatpush3.bf16.msra.mxu1 %v4729_v10  ;;  %v1567_v10 = vld [vmem:[#allocation2 + $0x1d0] sm:$0xff] }
 0x26c   : > { %4731 = vmatprep.subr.bf16.mxu1 %v5321_v38  ;;  %v4666_v16 = vpack.c.bf16 %v1568_v26, %v1567_v10  ;;  %v2106_v10 = vld [vmem:[#allocation2 + $0x4d8] sm:$0xff] }
 0x26d   : > { %4637 = vmatpush3.bf16.msra.mxu0 %v4636_v12  ;;  %v1927_v12 = vld [vmem:[#allocation2 + $0x3d0] sm:$0xff] }
 0x26e   : > { %4638 = vmatprep.subr.bf16.mxu0 %v5321_v38  ;;  %v4762_v19 = vpack.c.bf16 %v1928_v13, %v1927_v12  ;;  %v2108_v12 = vld [vmem:[#allocation2 + $0x4e8] sm:$0xff] }
 0x26f   : > { %4733 = vmatpush3.bf16.msra.mxu1 %v4732_v17  ;;  %v1569_v17 = vld [vmem:[#allocation2 + $0x1e0] sm:$0xff] }
 0x270   : > { %4734 = vmatprep.subr.bf16.mxu1 %v5321_v38  ;;  %v4669_v22 = vpack.c.bf16 %v1570_v18, %v1569_v17  ;;  %v2110_v17 = vld [vmem:[#allocation2 + $0x4f8] sm:$0xff] }
 0x271   : > { %4640 = vmatpush3.bf16.msra.mxu0 %v4639_v20  ;;  %v1929_v20 = vld [vmem:[#allocation2 + $0x3e0] sm:$0xff] }
 0x272   : > { %4641 = vmatprep.subr.bf16.mxu0 %v5321_v38  ;;  %v4765_v24 = vpack.c.bf16 %v1930_v21, %v1929_v20  ;;  %v2187_v20 = vld [vmem:[#allocation2 + $0x508] sm:$0xff] }
 0x273   : > { %4736 = vmatpush3.bf16.msra.mxu1 %v4735_v14  ;;  %v1571_v14 = vld [vmem:[#allocation2 + $0x1f0] sm:$0xff] }
 0x274   : > { %4737 = vmatprep.subr.bf16.mxu1 %v5321_v38  ;;  %v4672_v29 = vpack.c.bf16 %v1572_v23, %v1571_v14  ;;  %v2188_v14 = vld [vmem:[#allocation2 + $0x510] sm:$0xff]  ;;  %v2189_v23 = vld [vmem:[#allocation2 + $0x518] sm:$0xff] }
 0x275   : > { %4643 = vmatpush3.bf16.msra.mxu0 %v4642_v27  ;;  %v1931_v27 = vld [vmem:[#allocation2 + $0x3f0] sm:$0xff] }
 0x276   : > { %4644 = vmatprep.subr.bf16.mxu0 %v5321_v38 }
 0x277   : > { %4739 = vmatpush3.bf16.msra.mxu1 %v4738_v30  ;;  %v4768_v30 = vpack.c.bf16 %v1932_v28, %v1931_v27  ;;  %v2190_v27 = vld [vmem:[#allocation2 + $0x520] sm:$0xff]  ;;  %v2191_v28 = vld [vmem:[#allocation2 + $0x528] sm:$0xff] }
 0x278   : > { %4740 = vmatprep.subr.bf16.mxu1 %v5321_v38 }
 0x279   : > { %4646 = vmatpush3.bf16.msra.mxu0 %v4645_v33  ;;  %v1573_v33 = vrot.slane %v5854_v4, 3  ;;  %v2013_v4 = vld [vmem:[#allocation2 + $0x430] sm:$0xff] }
 0x27a   : > { %4647 = vmatprep.subr.bf16.mxu0 %v5321_v38 }
 0x27b   : > { %4742 = vmatpush3.bf16.msra.mxu1 %v4741_v15  ;;  %v2009_v15 = vld [vmem:[#allocation2 + $0x410] sm:$0xff] }
 0x27c   : > { %4743 = vmatprep.subr.bf16.mxu1 %v5321_v38  ;;  %v4774_v37 = vpack.c.bf16 %v2010_v36, %v2009_v15  ;;  %v2196_v15 = vld [vmem:[#allocation2 + $0x550] sm:$0xff]  ;;  %v2197_v36 = vld [vmem:[#allocation2 + $0x558] sm:$0xff] }
 0x27d   : > { %4649 = vmatpush3.bf16.msra.mxu0 %v4648_v39  ;;  %v2011_v39 = vld [vmem:[#allocation2 + $0x420] sm:$0xff] }
 0x27e   : > { %4650 = vmatprep.subr.bf16.mxu0 %v5321_v38  ;;  %v4777_v41 = vpack.c.bf16 %v2012_v40, %v2011_v39  ;;  %v2198_v39 = vld [vmem:[#allocation2 + $0x560] sm:$0xff]  ;;  %v2199_v40 = vld [vmem:[#allocation2 + $0x568] sm:$0xff] }
 0x27f   : > { %4745 = vmatpush3.bf16.msra.mxu1 %v4744_v42  ;;  %v2014_v42 = vld [vmem:[#allocation2 + $0x438] sm:$0xff] }
 0x280   : > { %3872 = vmatmul.mubr.f32.vlgmr.msra.gmra.mrb[2].mxu0 %v1483_v46  ;;  %4746 = vmatprep.subr.bf16.mxu1 %v5321_v38  ;;  %v4780_v43 = vpack.c.bf16 %v2014_v42, %v2013_v4  ;;  %v2200_v4 = vld [vmem:[#allocation2 + $0x570] sm:$0xff]  ;;  %v2201_v42 = vld [vmem:[#allocation2 + $0x578] sm:$0xff] }
 0x281   : > { %4652 = vmatpush3.bf16.msra.mxu0 %v4651_v45  ;;  %3906 = vmatprep.mubr.msk.f32.mxu0 %vm5322_vm3, %v5323_v58  ;;  %v2016_v45 = vld [vmem:[#allocation2 + $0x448] sm:$0xff] }
 0x282   : > { %4012 = vmatmul.mubr.f32.vlgmr.msra.gmra.mrb[0].mxu1 %v1843_v50  ;;  %4653 = vmatprep.subr.bf16.mxu0 %v5321_v38  ;;  %v4783_v46 = vpack.c.bf16 %v2016_v45, %v2015_v44  ;;  %v2019_v50 = vld [vmem:[#allocation2 + $0x460] sm:$0xff]  ;;  %v2277_v45 = vld [vmem:[#allocation2 + $0x588] sm:$0xff] }
 0x283   : > { %4748 = vmatpush3.bf16.msra.mxu1 %v4747_v49  ;;  %4046 = vmatprep.mubr.msk.f32.mxu1 %vm5322_vm3, %v5323_v58  ;;  %v4786_v49 = vpack.c.bf16 %v2018_v48, %v2017_v47  ;;  %v4789_v52 = vpack.c.bf16 %v2020_v51, %v2019_v50  ;;  %v2276_v44 = vld [vmem:[#allocation2 + $0x580] sm:$0xff]  ;;  %v2278_v48 = vld [vmem:[#allocation2 + $0x590] sm:$0xff] }
 0x284   : > { %4749 = vmatprep.subr.bf16.mxu1 %v5321_v38  ;;  %v2280_v51 = vld [vmem:[#allocation2 + $0x5a0] sm:$0xff] }
 0x285   : > { %4655 = vmatpush3.bf16.msra.mxu0 %v4654_v53  ;;  %v2021_v53 = vld [vmem:[#allocation2 + $0x470] sm:$0xff] }
 0x286   : > { %4656 = vmatprep.subr.bf16.mxu0 %v5321_v38  ;;  %v4792_v55 = vpack.c.bf16 %v2022_v54, %v2021_v53  ;;  %v2282_v54 = vld [vmem:[#allocation2 + $0x5b0] sm:$0xff] }
 0x287   : > { %4751 = vmatpush3.bf16.msra.mxu1 %v4750_v56  ;;  %v2095_v56 = vld [vmem:[#allocation2 + $0x480] sm:$0xff] }
 0x288   : > { %4752 = vmatprep.subr.bf16.mxu1 %v5321_v38  ;;  %v4795_v59 = vpack.c.bf16 %v2096_v57, %v2095_v56  ;;  %v2284_v57 = vld [vmem:[#allocation2 + $0x5c0] sm:$0xff] }
 0x289   : > { %4658 = vmatpush3.bf16.msra.mxu0 %v4657_v60  ;;  %v5936_v60 = vmax.f32 %v5852_v63, 0.0  ;;  %v2101_v63 = vld [vmem:[#allocation2 + $0x4b0] sm:$0xff] }
 0x28a   : > { %4659 = vmatprep.subr.bf16.mxu0 %v5321_v38  ;;  %v4804_v5 = vpack.c.bf16 %v2102_v1, %v2101_v63  ;;  %v2290_v1 = vld [vmem:[#allocation2 + $0x5f0] sm:$0xff] }
 0x28b   : > { %4754 = vmatpush3.bf16.msra.mxu1 %v4753_v25  ;;  %v4798_v25 = vpack.c.bf16 %v2098_v62, %v2097_v61  ;;  %v2202_v47 = vrot.slane %v5936_v60, 2  ;;  %v2286_v62 = vld [vmem:[#allocation2 + $0x5d0] sm:$0xff] }
 0x28c   : > { %4755 = vmatprep.subr.bf16.mxu1 %v5321_v38 }
 0x28d   : > { %4661 = vmatpush3.bf16.msra.mxu0 %v4660_v3  ;;  %v4801_v3 = vpack.c.bf16 %v2100_v2, %v2099_v0  ;;  %v2288_v2 = vld [vmem:[#allocation2 + $0x5e0] sm:$0xff] }
 0x28e   : > { %4662 = vmatprep.subr.bf16.mxu0 %v5321_v38 }
 0x28f   : > { %4757 = vmatpush3.bf16.msra.mxu1 %v4756_v6  ;;  %v2103_v6 = vld [vmem:[#allocation2 + $0x4c0] sm:$0xff] }
 0x290   : > { %4758 = vmatprep.subr.bf16.mxu1 %v5321_v38  ;;  %v4807_v8 = vpack.c.bf16 %v2104_v7, %v2103_v6  ;;  %v2366_v7 = vld [vmem:[#allocation2 + $0x600] sm:$0xff] }
 0x291   : > { %4664 = vmatpush3.bf16.msra.mxu0 %v4663_v9  ;;  %v2105_v9 = vld [vmem:[#allocation2 + $0x4d0] sm:$0xff] }
 0x292   : > { %4665 = vmatprep.subr.bf16.mxu0 %v5321_v38  ;;  %v4810_v26 = vpack.c.bf16 %v2106_v10, %v2105_v9  ;;  %v2292_v10 = vrot.slane %v5936_v60, 3 }
 0x293   : > { %4760 = vmatpush3.bf16.msra.mxu1 %v4759_v11  ;;  %v2107_v11 = vld [vmem:[#allocation2 + $0x4e0] sm:$0xff] }
 0x294   : > { %4761 = vmatprep.subr.bf16.mxu1 %v5321_v38  ;;  %v4813_v13 = vpack.c.bf16 %v2108_v12, %v2107_v11  ;;  %v2369_v11 = vld [vmem:[#allocation2 + $0x618] sm:$0xff]  ;;  %v2726_v12 = vld [vmem:[%s6158_s5] sm:$0xff] }
 0x295   : > { %4667 = vmatpush3.bf16.msra.mxu0 %v4666_v16  ;;  %v2109_v16 = vld [vmem:[#allocation2 + $0x4f0] sm:$0xff] }
 0x296   : > { %4668 = vmatprep.subr.bf16.mxu0 %v5321_v38  ;;  %v4816_v18 = vpack.c.bf16 %v2110_v17, %v2109_v16  ;;  %v2728_v16 = vld [vmem:[%s6158_s5 + $0x10] sm:$0xff] }
 0x297   : > { %4763 = vmatpush3.bf16.msra.mxu1 %v4762_v19  ;;  %v2186_v19 = vld [vmem:[#allocation2 + $0x500] sm:$0xff] }
 0x298   : > { %4764 = vmatprep.subr.bf16.mxu1 %v5321_v38  ;;  %v4819_v21 = vpack.c.bf16 %v2187_v20, %v2186_v19  ;;  %v2729_v19 = vld [vmem:[%s6158_s5 + $0x18] sm:$0xff]  ;;  %v2370_v20 = vld [vmem:[#allocation2 + $0x620] sm:$0xff] }
 0x299   : > { %4670 = vmatpush3.bf16.msra.mxu0 %v4669_v22  ;;  %v2112_v22 = vrot.slane %v5936_v60, 1 }
 0x29a   : > { %4671 = vmatprep.subr.bf16.mxu0 %v5321_v38 }
 0x29b   : > { %4766 = vmatpush3.bf16.msra.mxu1 %v4765_v24  ;;  %v4822_v24 = vpack.c.bf16 %v2189_v23, %v2188_v14  ;;  %v2730_v14 = vld [vmem:[%s6158_s5 + $0x20] sm:$0xff]  ;;  %v2731_v23 = vld [vmem:[%s6158_s5 + $0x28] sm:$0xff] }
 0x29c   : > { %4767 = vmatprep.subr.bf16.mxu1 %v5321_v38 }
 0x29d   : > { %4673 = vmatpush3.bf16.msra.mxu0 %v4672_v29  ;;  %v4825_v29 = vpack.c.bf16 %v2191_v28, %v2190_v27  ;;  %v2372_v27 = vld [vmem:[#allocation2 + $0x630] sm:$0xff]  ;;  %v2373_v28 = vld [vmem:[#allocation2 + $0x638] sm:$0xff] }
 0x29e   : > { %4962 = vmatprep.subr.bf16.mxu0 %v5321_v38 }
 0x29f   : > { %4769 = vmatpush3.bf16.msra.mxu1 %v4768_v30  ;;  %v2192_v30 = vld [vmem:[#allocation2 + $0x530] sm:$0xff] }
 0x2a0   : > { %3907 = vmatmul.mubr.f32.vlgmr.msra.gmra.mrb[2].mxu0 %v1573_v33  ;;  %4770 = vmatprep.subr.bf16.mxu1 %v5321_v38  ;;  %v4828_v32 = vpack.c.bf16 %v2193_v31, %v2192_v30  ;;  %v2194_v33 = vld [vmem:[#allocation2 + $0x540] sm:$0xff]  ;;  %v2732_v30 = vld [vmem:[%s6158_s5 + $0x30] sm:$0xff]  ;;  %v2733_v31 = vld [vmem:[%s6158_s5 + $0x38] sm:$0xff] }
 0x2a1   : > { %4361 = vmatprep.mubr.msk.f32.mxu0 %vm5322_vm3, %v5323_v58 }
 0x2a2   : > { %4047 = vmatmul.mubr.f32.vlgmr.msra.gmra.mrb[0].mxu1 %v1933_v35 }
 0x2a3   : > { %4772 = vmatpush3.bf16.msra.mxu1 %v4771_v34  ;;  %4081 = vmatprep.mubr.msk.f32.mxu1 %vm5322_vm3, %v5323_v58  ;;  %v2195_v34 = vld [vmem:[#allocation2 + $0x548] sm:$0xff] }
 0x2a4   : > { %4773 = vmatprep.subr.bf16.mxu1 %v5321_v38  ;;  %v4831_v35 = vpack.c.bf16 %v2195_v34, %v2194_v33  ;;  %v2374_v33 = vld [vmem:[#allocation2 + $0x640] sm:$0xff]  ;;  %v2375_v34 = vld [vmem:[#allocation2 + $0x648] sm:$0xff] }
 0x2a7   : > { %4775 = vmatpush3.bf16.msra.mxu1 %v4774_v37  ;;  %v4834_v37 = vpack.c.bf16 %v2197_v36, %v2196_v15  ;;  %v2734_v15 = vld [vmem:[%s6158_s5 + $0x40] sm:$0xff]  ;;  %v2735_v36 = vld [vmem:[%s6158_s5 + $0x48] sm:$0xff] }
 0x2a8   : > { %4776 = vmatprep.subr.bf16.mxu1 %v5321_v38 }
 0x2ab   : > { %4778 = vmatpush3.bf16.msra.mxu1 %v4777_v41  ;;  %v4837_v41 = vpack.c.bf16 %v2199_v40, %v2198_v39  ;;  %v2376_v39 = vld [vmem:[#allocation2 + $0x650] sm:$0xff]  ;;  %v2377_v40 = vld [vmem:[#allocation2 + $0x658] sm:$0xff] }
 0x2ac   : > { %4779 = vmatprep.subr.bf16.mxu1 %v5321_v38 }
 0x2af   : > { %4781 = vmatpush3.bf16.msra.mxu1 %v4780_v43  ;;  %v4840_v43 = vpack.c.bf16 %v2201_v42, %v2200_v4  ;;  %v2736_v4 = vld [vmem:[%s6158_s5 + $0x50] sm:$0xff]  ;;  %v2737_v42 = vld [vmem:[%s6158_s5 + $0x58] sm:$0xff] }
 0x2b0   : > { %4782 = vmatprep.subr.bf16.mxu1 %v5321_v38 }
 0x2b3   : > { %4784 = vmatpush3.bf16.msra.mxu1 %v4783_v46  ;;  %v4843_v46 = vpack.c.bf16 %v2277_v45, %v2276_v44  ;;  %v2378_v44 = vld [vmem:[#allocation2 + $0x660] sm:$0xff]  ;;  %v2379_v45 = vld [vmem:[#allocation2 + $0x668] sm:$0xff] }
 0x2b4   : > { %4785 = vmatprep.subr.bf16.mxu1 %v5321_v38 }
 0x2b7   : > { %4787 = vmatpush3.bf16.msra.mxu1 %v4786_v49  ;;  %v2279_v49 = vld [vmem:[#allocation2 + $0x598] sm:$0xff] }
 0x2b8   : > { %4788 = vmatprep.subr.bf16.mxu1 %v5321_v38  ;;  %v4846_v50 = vpack.c.bf16 %v2279_v49, %v2278_v48  ;;  %v2739_v48 = vld [vmem:[%s6158_s5 + $0x68] sm:$0xff]  ;;  %v4885_v49 = vpack.c.bf16 %v2379_v45, %v2378_v44  ;;  %v2636_v45 = vld [vmem:[#allocation2 + $0x780] sm:$0xff] }
 0x2bb   : > { %4790 = vmatpush3.bf16.msra.mxu1 %v4789_v52  ;;  %v2281_v52 = vld [vmem:[#allocation2 + $0x5a8] sm:$0xff] }
 0x2bc   : > { %4791 = vmatprep.subr.bf16.mxu1 %v5321_v38  ;;  %v4849_v53 = vpack.c.bf16 %v2281_v52, %v2280_v51  ;;  %v2381_v51 = vld [vmem:[#allocation2 + $0x678] sm:$0xff] }
 0x2bf   : > { %4793 = vmatpush3.bf16.msra.mxu1 %v4792_v55  ;;  %v2283_v55 = vld [vmem:[#allocation2 + $0x5b8] sm:$0xff] }
 0x2c0   : > { %4794 = vmatprep.subr.bf16.mxu1 %v5321_v38  ;;  %v4852_v56 = vpack.c.bf16 %v2283_v55, %v2282_v54  ;;  %v2456_v54 = vld [vmem:[#allocation2 + $0x680] sm:$0xff]  ;;  %v2457_v55 = vld [vmem:[#allocation2 + $0x688] sm:$0xff] }
 0x2c2   : > { %4082 = vmatmul.mubr.f32.vlgmr.msra.gmra.mrb[0].mxu1 %v5936_v60 }
 0x2c3   : > { %4796 = vmatpush3.bf16.msra.mxu1 %v4795_v59  ;;  %4116 = vmatprep.mubr.msk.f32.mxu1 %vm5322_vm3, %v5323_v58  ;;  %v2285_v59 = vld [vmem:[#allocation2 + $0x5c8] sm:$0xff] }
 0x2c4   : > { %4797 = vmatprep.subr.bf16.mxu1 %v5321_v38  ;;  %v4855_v61 = vpack.c.bf16 %v2285_v59, %v2284_v57  ;;  %v2382_v57 = vrot.slane %v5936_v60, 4  ;;  %v2458_v59 = vld [vmem:[#allocation2 + $0x690] sm:$0xff] }
 0x2c7   : > { %4799 = vmatpush3.bf16.msra.mxu1 %v4798_v25  ;;  %v2287_v25 = vld [vmem:[#allocation2 + $0x5d8] sm:$0xff] }
 0x2c8   : > { %4800 = vmatprep.subr.bf16.mxu1 %v5321_v38  ;;  %v4858_v0 = vpack.c.bf16 %v2287_v25, %v2286_v62  ;;  %v2460_v25 = vld [vmem:[#allocation2 + $0x6a0] sm:$0xff] }
 0x2cb   : > { %4802 = vmatpush3.bf16.msra.mxu1 %v4801_v3  ;;  %v2289_v3 = vld [vmem:[#allocation2 + $0x5e8] sm:$0xff] }
 0x2cc   : > { %4803 = vmatprep.subr.bf16.mxu1 %v5321_v38  ;;  %v4861_v63 = vpack.c.bf16 %v2289_v3, %v2288_v2  ;;  %v2462_v3 = vld [vmem:[#allocation2 + $0x6b0] sm:$0xff] }
 0x2cf   : > { %4805 = vmatpush3.bf16.msra.mxu1 %v4804_v5  ;;  %v2291_v5 = vld [vmem:[#allocation2 + $0x5f8] sm:$0xff] }
 0x2d0   : > { %4806 = vmatprep.subr.bf16.mxu1 %v5321_v38  ;;  %v4864_v6 = vpack.c.bf16 %v2291_v5, %v2290_v1  ;;  %v2464_v5 = vld [vmem:[#allocation2 + $0x6c0] sm:$0xff] }
 0x2d3   : > { %4808 = vmatpush3.bf16.msra.mxu1 %v4807_v8  ;;  %v2367_v8 = vld [vmem:[#allocation2 + $0x608] sm:$0xff] }
 0x2d4   : > { %4809 = vmatprep.subr.bf16.mxu1 %v5321_v38  ;;  %v4867_v9 = vpack.c.bf16 %v2367_v8, %v2366_v7  ;;  %v2466_v8 = vld [vmem:[#allocation2 + $0x6d0] sm:$0xff] }
 0x2d7   : > { %4811 = vmatpush3.bf16.msra.mxu1 %v4810_v26  ;;  %v2368_v26 = vld [vmem:[#allocation2 + $0x610] sm:$0xff] }
 0x2d8   : > { %4812 = vmatprep.subr.bf16.mxu1 %v5321_v38  ;;  %v4870_v17 = vpack.c.bf16 %v2369_v11, %v2368_v26  ;;  %v2468_v26 = vld [vmem:[#allocation2 + $0x6e0] sm:$0xff]  ;;  %v2469_v11 = vld [vmem:[#allocation2 + $0x6e8] sm:$0xff] }
 0x2db   : > { %4814 = vmatpush3.bf16.msra.mxu1 %v4813_v13  ;;  %v2727_v13 = vld [vmem:[%s6158_s5 + $0x8] sm:$0xff] }
 0x2dc   : > { %4815 = vmatprep.subr.bf16.mxu1 %v5321_v38 }
 0x2df   : > { %4817 = vmatpush3.bf16.msra.mxu1 %v4816_v18  ;;  %v4963_v18 = vpack.c.bf16 %v2727_v13, %v2726_v12  ;;  %v4909_v12 = vpack.c.bf16 %v2469_v11, %v2468_v26  ;;  %v2470_v13 = vld [vmem:[#allocation2 + $0x6f0] sm:$0xff]  ;;  %v1287_v11 = vld [vmem:[%s6157_s4] sm:$0x1] }
 0x2e0   : > { %4818 = vmatprep.subr.bf16.mxu1 %v5321_v38 }
 0x2e1   : > { %4964 = vmatpush3.bf16.msra.mxu0 %v4963_v18  ;;  %v2546_v18 = vld [vmem:[#allocation2 + $0x700] sm:$0xff] }
 0x2e2   : > { %4117 = vmatmul.mubr.f32.vlgmr.msra.gmra.mrb[0].mxu1 %v2112_v22  ;;  %v4966_v22 = vpack.c.bf16 %v2729_v19, %v2728_v16  ;;  %4965 = vmatprep.subr.bf16.mxu0 %v5321_v38  ;;  %v2471_v16 = vld [vmem:[#allocation2 + $0x6f8] sm:$0xff]  ;;  %v2547_v19 = vld [vmem:[#allocation2 + $0x708] sm:$0xff] }
 0x2e3   : > { %4820 = vmatpush3.bf16.msra.mxu1 %v4819_v21  ;;  %4151 = vmatprep.mubr.msk.f32.mxu1 %vm5322_vm3, %v5323_v58  ;;  %v2371_v21 = vld [vmem:[#allocation2 + $0x628] sm:$0xff] }
 0x2e4   : > { %4821 = vmatprep.subr.bf16.mxu1 %v5321_v38 }
 0x2e5   : > { %4967 = vmatpush3.bf16.msra.mxu0 %v4966_v22  ;;  %v2548_v22 = vld [vmem:[#allocation2 + $0x710] sm:$0xff] }
 0x2e6   : > { %4968 = vmatprep.subr.bf16.mxu0 %v5321_v38 }
 0x2e7   : > { %4823 = vmatpush3.bf16.msra.mxu1 %v4822_v24  ;;  %v4873_v24 = vpack.c.bf16 %v2371_v21, %v2370_v20  ;;  %v4915_v20 = vpack.c.bf16 %v2547_v19, %v2546_v18  ;;  %v2472_v21 = vrot.slane %v5936_v60, 5 }
 0x2e8   : > { %4824 = vmatprep.subr.bf16.mxu1 %v5321_v38 }
 0x2eb   : > { %4826 = vmatpush3.bf16.msra.mxu1 %v4825_v29  ;;  %v4969_v29 = vpack.c.bf16 %v2731_v23, %v2730_v14  ;;  %v2549_v14 = vld [vmem:[#allocation2 + $0x718] sm:$0xff] }
 0x2ec   : > { %4827 = vmatprep.subr.bf16.mxu1 %v5321_v38  ;;  %v4918_v23 = vpack.c.bf16 %v2549_v14, %v2548_v22  ;;  %v2816_v22 = vld [vmem:[#allocation5 + $0x18] sm:$0xff] }
 0x2ed   : > { %4970 = vmatpush3.bf16.msra.mxu0 %v4969_v29  ;;  %v2552_v29 = vld [vmem:[#allocation2 + $0x730] sm:$0xff] }
 0x2ee   : > { %4971 = vmatprep.subr.bf16.mxu0 %v5321_v38 }
 0x2ef   : > { %4829 = vmatpush3.bf16.msra.mxu1 %v4828_v32  ;;  %v4876_v32 = vpack.c.bf16 %v2373_v28, %v2372_v27  ;;  %v2551_v27 = vld [vmem:[#allocation2 + $0x728] sm:$0xff] }
 0x2f0   : > { %4830 = vmatprep.subr.bf16.mxu1 %v5321_v38 }
 0x2f3   : > { %4832 = vmatpush3.bf16.msra.mxu1 %v4831_v35  ;;  %v4972_v35 = vpack.c.bf16 %v2733_v31, %v2732_v30  ;;  %v2553_v30 = vld [vmem:[#allocation2 + $0x738] sm:$0xff] }
 0x2f4   : > { %4833 = vmatprep.subr.bf16.mxu1 %v5321_v38  ;;  %v4924_v31 = vpack.c.bf16 %v2553_v30, %v2552_v29  ;;  %v2820_v29 = vld [vmem:[#allocation5 + $0x38] sm:$0xff] }
 0x2f5   : > { %4973 = vmatpush3.bf16.msra.mxu0 %v4972_v35  ;;  %v2556_v35 = vld [vmem:[#allocation2 + $0x750] sm:$0xff] }
 0x2f6   : > { %4974 = vmatprep.subr.bf16.mxu0 %v5321_v38 }
 0x2f7   : > { %4835 = vmatpush3.bf16.msra.mxu1 %v4834_v37  ;;  %v4879_v37 = vpack.c.bf16 %v2375_v34, %v2374_v33  ;;  %v2555_v33 = vld [vmem:[#allocation2 + $0x748] sm:$0xff] }
 0x2f8   : > { %4836 = vmatprep.subr.bf16.mxu1 %v5321_v38 }
 0x2fb   : > { %4838 = vmatpush3.bf16.msra.mxu1 %v4837_v41  ;;  %v4975_v41 = vpack.c.bf16 %v2735_v36, %v2734_v15  ;;  %v2557_v15 = vld [vmem:[#allocation2 + $0x758] sm:$0xff] }
 0x2fc   : > { %4839 = vmatprep.subr.bf16.mxu1 %v5321_v38 }
 0x2fd   : > { %4976 = vmatpush3.bf16.msra.mxu0 %v4975_v41  ;;  %v2559_v41 = vld [vmem:[#allocation2 + $0x768] sm:$0xff] }
 0x2fe   : > { %4977 = vmatprep.subr.bf16.mxu0 %v5321_v38 }
 0x2ff   : > { %4841 = vmatpush3.bf16.msra.mxu1 %v4840_v43  ;;  %v4882_v43 = vpack.c.bf16 %v2377_v40, %v2376_v39  ;;  %v2558_v40 = vld [vmem:[#allocation2 + $0x760] sm:$0xff] }
 0x300   : > { %4842 = vmatprep.subr.bf16.mxu1 %v5321_v38 }
 0x302   : > { %4152 = vmatmul.mubr.f32.vlgmr.msra.gmra.mrb[0].mxu1 %v2202_v47  ;;  %v2738_v47 = vld [vmem:[%s6158_s5 + $0x60] sm:$0xff] }
 0x303   : > { %4844 = vmatpush3.bf16.msra.mxu1 %v4843_v46  ;;  %4186 = vmatprep.mubr.msk.f32.mxu1 %vm5322_vm3, %v5323_v58  ;;  %v4978_v46 = vpack.c.bf16 %v2737_v42, %v2736_v4  ;;  %v4981_v52 = vpack.c.bf16 %v2739_v48, %v2738_v47  ;;  %v4933_v4 = vpack.c.bf16 %v2559_v41, %v2558_v40  ;;  %v2560_v42 = vld [vmem:[#allocation2 + $0x770] sm:$0xff]  ;;  %v2562_v48 = vrot.slane %v5936_v60, 6  ;;  %v2828_v41 = vld [vmem:[#allocation5 + $0x78] sm:$0xff] }
 0x304   : > { %4845 = vmatprep.subr.bf16.mxu1 %v5321_v38  ;;  %v2827_v40 = vld [vmem:[#allocation5 + $0x70] sm:$0xff] }
 0x305   : > { %4979 = vmatpush3.bf16.msra.mxu0 %v4978_v46  ;;  %v2637_v46 = vld [vmem:[#allocation2 + $0x788] sm:$0xff] }
 0x306   : > { %4980 = vmatprep.subr.bf16.mxu0 %v5321_v38  ;;  %v4939_v47 = vpack.c.bf16 %v2637_v46, %v2636_v45 }
 0x307   : > { %4847 = vmatpush3.bf16.msra.mxu1 %v4846_v50  ;;  %v2380_v50 = vld [vmem:[#allocation2 + $0x670] sm:$0xff] }
 0x308   : > { %4848 = vmatprep.subr.bf16.mxu1 %v5321_v38 }
 0x309   : > { %4982 = vmatpush3.bf16.msra.mxu0 %v4981_v52  ;;  %v2640_v52 = vld [vmem:[#allocation2 + $0x7a0] sm:$0xff] }
 0x30a   : > { %4983 = vmatprep.subr.bf16.mxu0 %v5321_v38 }
 0x30b   : > { %4850 = vmatpush3.bf16.msra.mxu1 %v4849_v53  ;;  %v4888_v53 = vpack.c.bf16 %v2381_v51, %v2380_v50  ;;  %v2639_v50 = vld [vmem:[#allocation2 + $0x798] sm:$0xff] }
 0x30c   : > { %4851 = vmatprep.subr.bf16.mxu1 %v5321_v38 }
 0x30f   : > { %4853 = vmatpush3.bf16.msra.mxu1 %v4852_v56  ;;  %v4891_v56 = vpack.c.bf16 %v2457_v55, %v2456_v54  ;;  %v2642_v55 = vld [vmem:[#allocation2 + $0x7b0] sm:$0xff] }
 0x310   : > { %4854 = vmatprep.subr.bf16.mxu1 %v5321_v38 }
 0x313   : > { %4856 = vmatpush3.bf16.msra.mxu1 %v4855_v61  ;;  %v2459_v61 = vld [vmem:[#allocation2 + $0x698] sm:$0xff] }
 0x314   : > { %4857 = vmatprep.subr.bf16.mxu1 %v5321_v38  ;;  %v4894_v62 = vpack.c.bf16 %v2459_v61, %v2458_v59  ;;  %v2644_v59 = vld [vmem:[#allocation2 + $0x7c0] sm:$0xff]  ;;  %v2645_v61 = vld [vmem:[#allocation2 + $0x7c8] sm:$0xff] }
 0x317   : > { %4859 = vmatpush3.bf16.msra.mxu1 %v4858_v0  ;;  %v2461_v0 = vld [vmem:[#allocation2 + $0x6a8] sm:$0xff] }
 0x318   : > { %4860 = vmatprep.subr.bf16.mxu1 %v5321_v38  ;;  %v4897_v2 = vpack.c.bf16 %v2461_v0, %v2460_v25  ;;  %v2646_v25 = vld [vmem:[#allocation2 + $0x7d0] sm:$0xff]  ;;  %v2647_v0 = vld [vmem:[#allocation2 + $0x7d8] sm:$0xff] }
 0x31b   : > { %4862 = vmatpush3.bf16.msra.mxu1 %v4861_v63  ;;  %v2463_v63 = vld [vmem:[#allocation2 + $0x6b8] sm:$0xff] }
 0x31c   : > { %4863 = vmatprep.subr.bf16.mxu1 %v5321_v38  ;;  %v4900_v1 = vpack.c.bf16 %v2463_v63, %v2462_v3  ;;  %v2648_v3 = vld [vmem:[#allocation2 + $0x7e0] sm:$0xff]  ;;  %v2649_v63 = vld [vmem:[#allocation2 + $0x7e8] sm:$0xff] }
 0x31f   : > { %4865 = vmatpush3.bf16.msra.mxu1 %v4864_v6  ;;  %v2465_v6 = vld [vmem:[#allocation2 + $0x6c8] sm:$0xff] }
 0x320   : > { %4866 = vmatprep.subr.bf16.mxu1 %v5321_v38  ;;  %v4903_v7 = vpack.c.bf16 %v2465_v6, %v2464_v5  ;;  %v2650_v5 = vld [vmem:[#allocation2 + $0x7f0] sm:$0xff]  ;;  %v2651_v6 = vld [vmem:[#allocation2 + $0x7f8] sm:$0xff] }
 0x322   : > { %4187 = vmatmul.mubr.f32.vlgmr.msra.gmra.mrb[0].mxu1 %v2292_v10 }
 0x323   : > { %4868 = vmatpush3.bf16.msra.mxu1 %v4867_v9  ;;  %4221 = vmatprep.mubr.msk.f32.mxu1 %vm5322_vm3, %v5323_v58  ;;  %v2467_v9 = vld [vmem:[#allocation2 + $0x6d8] sm:$0xff] }
 0x324   : > { %4869 = vmatprep.subr.bf16.mxu1 %v5321_v38  ;;  %v4906_v10 = vpack.c.bf16 %v2467_v9, %v2466_v8  ;;  %v2652_v8 = vrot.slane %v5936_v60, 7  ;;  %v2740_v9 = vld [vmem:[%s6158_s5 + $0x70] sm:$0xff]  ;;  %v2813_v60 = vld [vmem:[#allocation5] sm:$0xff] }
 0x327   : > { %4871 = vmatpush3.bf16.msra.mxu1 %v4870_v17  ;;  %v4912_v17 = vpack.c.bf16 %v2471_v16, %v2470_v13  ;;  %v2814_v13 = vld [vmem:[#allocation5 + $0x8] sm:$0xff] }
 0x328   : > { %4872 = vmatprep.subr.bf16.mxu1 %v5321_v38  ;;  %v4987_v19 = vpack.c.bf16 %v2814_v13, %v2813_v60 }
 0x32b   : > { %4874 = vmatpush3.bf16.msra.mxu1 %v4873_v24  ;;  %v2550_v24 = vld [vmem:[#allocation2 + $0x720] sm:$0xff] }
 0x32c   : > { %4875 = vmatprep.subr.bf16.mxu1 %v5321_v38  ;;  %v4921_v28 = vpack.c.bf16 %v2551_v27, %v2550_v24  ;;  %v2818_v24 = vld [vmem:[#allocation5 + $0x28] sm:$0xff] }
 0x32f   : > { %4877 = vmatpush3.bf16.msra.mxu1 %v4876_v32  ;;  %v2554_v32 = vld [vmem:[#allocation2 + $0x740] sm:$0xff] }
 0x330   : > { %4878 = vmatprep.subr.bf16.mxu1 %v5321_v38  ;;  %v4927_v34 = vpack.c.bf16 %v2555_v33, %v2554_v32  ;;  %v2822_v32 = vld [vmem:[#allocation5 + $0x48] sm:$0xff] }
 0x333   : > { %4880 = vmatpush3.bf16.msra.mxu1 %v4879_v37  ;;  %v4930_v37 = vpack.c.bf16 %v2557_v15, %v2556_v35  ;;  %v2824_v35 = vld [vmem:[#allocation5 + $0x58] sm:$0xff] }
 0x334   : > { %4881 = vmatprep.subr.bf16.mxu1 %v5321_v38 }
 0x337   : > { %4883 = vmatpush3.bf16.msra.mxu1 %v4882_v43  ;;  %v2561_v43 = vld [vmem:[#allocation2 + $0x778] sm:$0xff] }
 0x338   : > { %4884 = vmatprep.subr.bf16.mxu1 %v5321_v38  ;;  %v4936_v44 = vpack.c.bf16 %v2561_v43, %v2560_v42  ;;  %v2901_v42 = vld [vmem:[#allocation7] sm:$0xff]  ;;  %v2902_v43 = vld [vmem:[#allocation7 + $0x8] sm:$0xff] }
 0x339   : > { %v5011_v46 = vpack.c.bf16 %v2902_v43, %v2901_v42 }
 0x33b   : > { %4886 = vmatpush3.bf16.msra.mxu1 %v4885_v49  ;;  %v2638_v49 = vld [vmem:[#allocation2 + $0x790] sm:$0xff] }
 0x33c   : > { %4887 = vmatprep.subr.bf16.mxu1 %v5321_v38  ;;  %v4942_v51 = vpack.c.bf16 %v2639_v50, %v2638_v49  ;;  %v2903_v49 = vld [vmem:[#allocation7 + $0x10] sm:$0xff]  ;;  %v2904_v50 = vld [vmem:[#allocation7 + $0x18] sm:$0xff] }
 0x33f   : > { %4889 = vmatpush3.bf16.msra.mxu1 %v4888_v53  ;;  %v2641_v53 = vld [vmem:[#allocation2 + $0x7a8] sm:$0xff] }
 0x340   : > { %4890 = vmatprep.subr.bf16.mxu1 %v5321_v38  ;;  %v4945_v54 = vpack.c.bf16 %v2641_v53, %v2640_v52  ;;  %v2905_v52 = vld [vmem:[#allocation7 + $0x20] sm:$0xff]  ;;  %v2906_v53 = vld [vmem:[#allocation7 + $0x28] sm:$0xff] }
 0x342   : > { %4222 = vmatmul.mubr.f32.vlgmr.msra.gmra.mrb[0].mxu1 %v2382_v57 }
 0x343   : > { %4892 = vmatpush3.bf16.msra.mxu1 %v4891_v56  ;;  %4256 = vmatprep.mubr.msk.f32.mxu1 %vm5322_vm3, %v5323_v58  ;;  %v2643_v56 = vld [vmem:[#allocation2 + $0x7b8] sm:$0xff] }
 0x344   : > { %4893 = vmatprep.subr.bf16.mxu1 %v5321_v38  ;;  %v4948_v57 = vpack.c.bf16 %v2643_v56, %v2642_v55  ;;  %v2907_v55 = vld [vmem:[#allocation7 + $0x30] sm:$0xff]  ;;  %v2908_v56 = vld [vmem:[#allocation7 + $0x38] sm:$0xff] }
 0x347   : > { %4895 = vmatpush3.bf16.msra.mxu1 %v4894_v62  ;;  %v4951_v62 = vpack.c.bf16 %v2645_v61, %v2644_v59  ;;  %v2909_v59 = vld [vmem:[#allocation7 + $0x40] sm:$0xff]  ;;  %v2910_v61 = vld [vmem:[#allocation7 + $0x48] sm:$0xff] }
 0x348   : > { %4896 = vmatprep.subr.bf16.mxu1 %v5321_v38 }
 0x34b   : > { %4898 = vmatpush3.bf16.msra.mxu1 %v4897_v2  ;;  %v4954_v2 = vpack.c.bf16 %v2647_v0, %v2646_v25  ;;  %v2912_v25 = vld [vmem:[#allocation7 + $0x58] sm:$0xff] }
 0x34c   : > { %4899 = vmatprep.subr.bf16.mxu1 %v5321_v38 }
 0x34f   : > { %4901 = vmatpush3.bf16.msra.mxu1 %v4900_v1  ;;  %v4957_v1 = vpack.c.bf16 %v2649_v63, %v2648_v3  ;;  %v2914_v3 = vld [vmem:[#allocation7 + $0x68] sm:$0xff] }
 0x350   : > { %4902 = vmatprep.subr.bf16.mxu1 %v5321_v38 }
 0x353   : > { %4904 = vmatpush3.bf16.msra.mxu1 %v4903_v7  ;;  %v4960_v7 = vpack.c.bf16 %v2651_v6, %v2650_v5  ;;  %v2916_v5 = vld [vmem:[#allocation7 + $0x78] sm:$0xff] }
 0x354   : > { %4905 = vmatprep.subr.bf16.mxu1 %v5321_v38 }
 0x357   : > { %4907 = vmatpush3.bf16.msra.mxu1 %v4906_v10  ;;  %v2741_v10 = vld [vmem:[%s6158_s5 + $0x78] sm:$0xff] }
 0x358   : > { %4908 = vmatprep.subr.bf16.mxu1 %v5321_v38  ;;  %v4984_v26 = vpack.c.bf16 %v2741_v10, %v2740_v9 }
 0x35a   : > { %4985 = vmatpush3.bf16.msra.mxu0 %v4984_v26 }
 0x35b   : > { %4910 = vmatpush3.bf16.msra.mxu1 %v4909_v12  ;;  %4986 = vmatprep.subr.bf16.mxu0 %v5321_v38 }
 0x35c   : > { %4911 = vmatprep.subr.bf16.mxu1 %v5321_v38 }
 0x35f   : > { %4913 = vmatpush3.bf16.msra.mxu1 %v4912_v17 }
 0x360   : > { %4914 = vmatprep.subr.bf16.mxu1 %v5321_v38 }
 0x362   : > { %4257 = vmatmul.mubr.f32.vlgmr.msra.gmra.mrb[0].mxu1 %v2472_v21  ;;  %v2815_v21 = vld [vmem:[#allocation5 + $0x10] sm:$0xff] }
 0x363   : > { %4916 = vmatpush3.bf16.msra.mxu1 %v4915_v20  ;;  %4291 = vmatprep.mubr.msk.f32.mxu1 %vm5322_vm3, %v5323_v58  ;;  %v4990_v14 = vpack.c.bf16 %v2816_v22, %v2815_v21 }
 0x364   : > { %4917 = vmatprep.subr.bf16.mxu1 %v5321_v38 }
 0x367   : > { %4919 = vmatpush3.bf16.msra.mxu1 %v4918_v23  ;;  %v2817_v23 = vld [vmem:[#allocation5 + $0x20] sm:$0xff] }
 0x368   : > { %4920 = vmatprep.subr.bf16.mxu1 %v5321_v38  ;;  %v4993_v27 = vpack.c.bf16 %v2818_v24, %v2817_v23 }
 0x36b   : > { %4922 = vmatpush3.bf16.msra.mxu1 %v4921_v28  ;;  %v2819_v28 = vld [vmem:[#allocation5 + $0x30] sm:$0xff] }
 0x36c   : > { %4923 = vmatprep.subr.bf16.mxu1 %v5321_v38  ;;  %v4996_v30 = vpack.c.bf16 %v2820_v29, %v2819_v28 }
 0x36f   : > { %4925 = vmatpush3.bf16.msra.mxu1 %v4924_v31  ;;  %v2821_v31 = vld [vmem:[#allocation5 + $0x40] sm:$0xff] }
 0x370   : > { %4926 = vmatprep.subr.bf16.mxu1 %v5321_v38  ;;  %v4999_v33 = vpack.c.bf16 %v2822_v32, %v2821_v31 }
 0x373   : > { %v6050_v36 = vpop.f32.mrb[2].mxu0  ;;  %4928 = vmatpush3.bf16.msra.mxu1 %v4927_v34  ;;  %v2823_v34 = vld [vmem:[#allocation5 + $0x50] sm:$0xff] }
 0x374   : > { %v3908_v39 = vpop.f32.mrb[3].mxu0  ;;  %4929 = vmatprep.subr.bf16.mxu1 %v5321_v38  ;;  %v5034_v12 = vadd.f32 %v6050_v36, %v1287_v11  ;;  %v5002_v15 = vpack.c.bf16 %v2824_v35, %v2823_v34  ;;  %v2825_v36 = vld [vmem:[#allocation5 + $0x60] sm:$0xff] }
 0x375   : > { %v2917_v11 = vld [vmem:[%s6163_s10] sm:$0x1] }
 0x377   : > { %4931 = vmatpush3.bf16.msra.mxu1 %v4930_v37  ;;  %v2826_v37 = vld [vmem:[#allocation5 + $0x68] sm:$0xff] }
 0x378   : > { %4932 = vmatprep.subr.bf16.mxu1 %v5321_v38  ;;  %v5005_v39 = vpack.c.bf16 %v2826_v37, %v2825_v36 }
 0x37b   : > { %4934 = vmatpush3.bf16.msra.mxu1 %v4933_v4  ;;  %v5008_v4 = vpack.c.bf16 %v2828_v41, %v2827_v40 }
 0x37c   : > { %4935 = vmatprep.subr.bf16.mxu1 %v5321_v38 }
 0x37f   : > { %4937 = vmatpush3.bf16.msra.mxu1 %v4936_v44  ;;  %v2742_v44 = vld [vmem:[%s6159_s6] sm:$0x1] }
 0x380   : > { %4938 = vmatprep.subr.bf16.mxu1 %v5321_v38 }
 0x382   : > { %4292 = vmatmul.mubr.f32.vlgmr.msra.gmra.mrb[0].mxu1 %v2562_v48 }
 0x383   : > { %4940 = vmatpush3.bf16.msra.mxu1 %v4939_v47  ;;  %4326 = vmatprep.mubr.msk.f32.mxu1 %vm5322_vm3, %v5323_v58 }
 0x384   : > { %4941 = vmatprep.subr.bf16.mxu1 %v5321_v38 }
 0x387   : > { %4943 = vmatpush3.bf16.msra.mxu1 %v4942_v51  ;;  %v5014_v51 = vpack.c.bf16 %v2904_v50, %v2903_v49 }
 0x388   : > { %4944 = vmatprep.subr.bf16.mxu1 %v5321_v38 }
 0x38b   : > { %4946 = vmatpush3.bf16.msra.mxu1 %v4945_v54  ;;  %v5017_v54 = vpack.c.bf16 %v2906_v53, %v2905_v52 }
 0x38c   : > { %4947 = vmatprep.subr.bf16.mxu1 %v5321_v38 }
 0x38f   : > { %4949 = vmatpush3.bf16.msra.mxu1 %v4948_v57  ;;  %v5020_v57 = vpack.c.bf16 %v2908_v56, %v2907_v55 }
 0x390   : > { %4950 = vmatprep.subr.bf16.mxu1 %v5321_v38 }
 0x393   : > { %4952 = vmatpush3.bf16.msra.mxu1 %v4951_v62  ;;  %v5023_v62 = vpack.c.bf16 %v2910_v61, %v2909_v59 }
 0x394   : > { %4953 = vmatprep.subr.bf16.mxu1 %v5321_v38 }
 0x397   : > { %4955 = vmatpush3.bf16.msra.mxu1 %v4954_v2  ;;  %v2913_v2 = vld [vmem:[#allocation7 + $0x60] sm:$0xff] }
 0x398   : > { %4956 = vmatprep.subr.bf16.mxu1 %v5321_v38  ;;  %v5029_v63 = vpack.c.bf16 %v2914_v3, %v2913_v2 }
 0x39b   : > { %4958 = vmatpush3.bf16.msra.mxu1 %v4957_v1  ;;  %v2915_v1 = vld [vmem:[#allocation7 + $0x70] sm:$0xff] }
 0x39c   : > { %4959 = vmatprep.subr.bf16.mxu1 %v5321_v38  ;;  %v5032_v6 = vpack.c.bf16 %v2916_v5, %v2915_v1 }
 0x39f   : > { %4961 = vmatpush3.bf16.msra.mxu1 %v4960_v7  ;;  %v2829_v7 = vld [vmem:[%s6161_s8] sm:$0x1] }
 0x3a2   : > { %4327 = vmatmul.mubr.f32.vlgmr.msra.gmra.mrb[0].mxu1 %v2652_v8 }
 0x475   : > { %v2720_v16 = vpop.f32.mrb[0].mxu1 }
 0x476   : > { %v5035_v17 = vadd.f32 %v5034_v12, %v2720_v16  ;;  %v4328_v18 = vpop.f32.mrb[1].mxu1 }
 0x478   : > { %v2725_v20 = vmax.f32 %v5035_v17, 0.0 }
 0x47a   : > { %4362 = vmatmul.mubr.f32.vlgmr.msra.gmra.mrb[4].mxu0 %v2725_v20 }
 0x47b   : > { %4988 = vmatpush3.bf16.msra.mxu0 %v4987_v19  ;;  %4396 = vmatprep.mubr.msk.f32.mxu0 %vm5322_vm3, %v5323_v58 }
 0x47c   : > { %4989 = vmatprep.subr.bf16.mxu0 %v5321_v38 }
 0x47f   : > { %4991 = vmatpush3.bf16.msra.mxu0 %v4990_v14 }
 0x480   : > { %4992 = vmatprep.subr.bf16.mxu0 %v5321_v38 }
 0x483   : > { %4994 = vmatpush3.bf16.msra.mxu0 %v4993_v27 }
 0x484   : > { %4995 = vmatprep.subr.bf16.mxu0 %v5321_v38 }
 0x487   : > { %4997 = vmatpush3.bf16.msra.mxu0 %v4996_v30 }
 0x488   : > { %4998 = vmatprep.subr.bf16.mxu0 %v5321_v38 }
 0x48b   : > { %5000 = vmatpush3.bf16.msra.mxu0 %v4999_v33 }
 0x48c   : > { %5001 = vmatprep.subr.bf16.mxu0 %v5321_v38 }
 0x48f   : > { %5003 = vmatpush3.bf16.msra.mxu0 %v5002_v15 }
 0x490   : > { %5004 = vmatprep.subr.bf16.mxu0 %v5321_v38 }
 0x493   : > { %5006 = vmatpush3.bf16.msra.mxu0 %v5005_v39 }
 0x494   : > { %5007 = vmatprep.subr.bf16.mxu0 %v5321_v38 }
 0x497   : > { %5009 = vmatpush3.bf16.msra.mxu0 %v5008_v4 }
 0x498   : > { %5010 = vmatprep.subr.bf16.mxu0 %v5321_v38 }
 0x54d   : > { %v2809_v45 = vpop.f32.mrb[4].mxu0 }
 0x54e   : > { %v2810_v47 = vadd.f32 %v2809_v45, %v2742_v44  ;;  %v4363_v48 = vpop.f32.mrb[5].mxu0 }
 0x550   : > { %4397 = vmatmul.mubr.f32.vlgmr.msra.gmra.mrb[6].mxu0 %v2810_v47 }
 0x551   : > { %5012 = vmatpush3.bf16.msra.mxu0 %v5011_v46  ;;  %4431 = vmatprep.mubr.msk.f32.mxu0 %vm5322_vm3, %v5323_v58  ;;  %v2911_v58 = vld [vmem:[#allocation7 + $0x50] sm:$0xff] }
 0x552   : > { %5013 = vmatprep.subr.bf16.mxu0 %v5321_v38  ;;  %v5026_v0 = vpack.c.bf16 %v2912_v25, %v2911_v58 }
 0x555   : > { %5015 = vmatpush3.bf16.msra.mxu0 %v5014_v51 }
 0x556   : > { %5016 = vmatprep.subr.bf16.mxu0 %v5321_v38 }
 0x559   : > { %5018 = vmatpush3.bf16.msra.mxu0 %v5017_v54 }
 0x55a   : > { %5019 = vmatprep.subr.bf16.mxu0 %v5321_v38 }
 0x55d   : > { %5021 = vmatpush3.bf16.msra.mxu0 %v5020_v57 }
 0x55e   : > { %5022 = vmatprep.subr.bf16.mxu0 %v5321_v38 }
 0x561   : > { %5024 = vmatpush3.bf16.msra.mxu0 %v5023_v62 }
 0x562   : > { %5025 = vmatprep.subr.bf16.mxu0 %v5321_v38 }
 0x565   : > { %5027 = vmatpush3.bf16.msra.mxu0 %v5026_v0 }
 0x566   : > { %5028 = vmatprep.subr.bf16.mxu0 %v5321_v38 }
 0x569   : > { %5030 = vmatpush3.bf16.msra.mxu0 %v5029_v63 }
 0x56a   : > { %5031 = vmatprep.subr.bf16.mxu0 %v5321_v38 }
 0x56d   : > { %5033 = vmatpush3.bf16.msra.mxu0 %v5032_v6 }
 0x623   : > { %v2896_v8 = vpop.f32.mrb[6].mxu0 }
 0x624   : > { %v2897_v9 = vadd.f32 %v2896_v8, %v2829_v7  ;;  %v4398_v10 = vpop.f32.mrb[7].mxu0 }
 0x626   : > { %v2900_v26 = vmax.f32 %v2897_v9, 0.0 }
 0x628   : > { %4432 = vmatmul.mubr.f32.vlgmr.msra.gmra.mrb[8].mxu0 %v2900_v26 }
 0x6fb   : > { %v2984_v38 = vpop.f32.mrb[8].mxu0 }
 0x6fc   : > { %v2985_v12 = vadd.f32 %v2984_v38, %v2917_v11  ;;  %v4433_v60 = vpop.f32.mrb[9].mxu0 }
 0x6fe   : > { %2988 = vst [vmem:[%s422_s30] sm:$0x1] %v2985_v12 }
 0x6ff   : > { %5255 = shalt.err (!%p5252_p9)
}
 0x700   : > { %s5256_s13 = scalar_lea.hbm %s6111_s15, 16  ;;  %s5260_s24 = scalar_lea.hbm %s6192_s12, 32 }
 0x701   : > { %p5257_p2 = scmp.ne.s32.totalorder %s6111_s15, %s5256_s13  ;;  %p5261_p5 = scmp.lt.u32.totalorder %s6111_s15, %s6192_s12 }
 0x702   : > { %p5262_p10 = scmp.lt.u32.totalorder %s5260_s24, %s5256_s13  ;;  %p5264_p12 = scmp.lt.u32.totalorder %s5256_s13, %s6111_s15 }
 0x703   : > { %p5258_p0 = pnand %p5257_p2, %p6193_p7 }
 0x704   : > { %p5263_p4 = por %p5262_p10, %p5261_p5 }
 0x705   : > { %p5259_p3 = pneg %p5258_p0 }
 0x706   : > { %p5265_p8 = por %p5264_p12, %p5263_p4 }
 0x708   : > { %p5266_p11 = pnand %p5265_p8, %p5259_p3 }
 0x70a   : > { %5269 = shalt.err (!%p5266_p11)
}
 0x70b   : > { %5093 = dma.vmem_to_hbm [thread:$0]  (%p6193_p7), %s6113_s14, 16, %s6111_s15, %s2990_s26  }
 0x70c PF: > { %s6194_s25 = sld [smem:[#allocation14_spill]]  ;;  %s6195_s30 = sld [smem:[#allocation12_spill]] }
 0x70d   : > { %s6196_s16 = sld [smem:[#allocation17_spill]] }
 0x712   : > { %p5115_p13 = scmp.ge.s32.totalorder %s6194_s25, 2  ;;  %s3014_s19 = sand.u32 1, %s6195_s30  }
 0x713   : > { %p6197_p1 = scmp.ne.s32.totalorder %s6196_s16, 0  ;;  %s3015_s11 = scalar_lea.sflag [#allocation4], %s3014_s19 }
 0x715   : > { %p5106_p6 = pnand %p5115_p13, %p6197_p1 }
 0x717   : > { %5295 = dma.done.wait (!%p5106_p6), %s3015_s11, 16  }
 0x718   : > { %5297 = vsyncadd (!%p5106_p6), %s3015_s11, 4294967280  ;;  %s6198_s20 = sld [smem:[#allocation15_spill]]  ;;  %s6199_s21 = sld [smem:[#allocation13_spill]] }
 0x719   : > { %s6200_s19 = sld [smem:[#allocation16_spill]]  ;;  %s6201_s17 = smov %s5304_s18 }
 0x71e   : > { %p23_p9 = scmp.ge.s32.totalorder %s6198_s20, 4   ;;  %s6202_s18 = smov %s6199_s21 }
 0x720   :  { %25 = sbr.rel (!%p23_p9) target bundleno = 7 (0x7), region = 135 }
 0x727   :  { %3019 = vsyncpa [#allocation3], 1 }
 0x728   :  { %3021 = vsyncpa [#allocation3 + $0x1], 1 }
 0x729   :  { %3022 = vsyncpa [#allocation6], 1 }
 0x72a   :  { %3023 = vsyncpa [#allocation4], 1 }
 0x72b   :  { %3025 = vsyncpa [#allocation4 + $0x1], 1 }

</bundles_post_ra>
